<compile_context>
chip_gen: v5e
topology: v5e:2x2
jax: 0.10.0
libtpu: 0.0.40
codegen_flags: <defaults>
</compile_context>

<pallas_src>
import math
import functools

import jax
import jax.numpy as jnp
from jax import lax
from jax.experimental import pallas as pl
from jax.experimental.pallas import tpu as pltpu


# ----------------------------------------------------------------------------
# Fused kernel
# ----------------------------------------------------------------------------

def _vae_fused_kernel(h_ref, mask_ref, gumbel_ref, eps_ref, *refs,
                      block_dims, num_heads, y_dim, latent, inv_temp, hard):
    f32 = jnp.float32
    bf16 = jnp.bfloat16

    nb = len(block_dims)
    it = iter(refs)
    blk_refs = [(next(it), next(it)) for _ in range(nb)]   # (wqkv_aug, wo_aug)
    wy_ref = next(it)        # (latent+1, y_dim)      bf16
    wzx_ref = next(it)       # (latent+1, 2*latent)   bf16 (bias folded here)
    wzy_ref = next(it)       # (y_dim,   2*latent)    bf16
    wyd_ref = next(it)       # (y_dim+1, 2*latent)    bf16
    zpack_ref = next(it)     # out: (N, 3*latent)  [mu | var | z]
    ydec_ref = next(it)      # out: (N, 2*latent)  [y_mu | y_var]
    cat_ref = next(it)       # out: (N, 3*y_dim)   [logits | prob | y]
    recon_ref = next(it)     # out: (N, N)

    x = h_ref[0]                                  # (N, D0) f32
    m = mask_ref[0]                               # (N, N)  f32
    n = x.shape[0]
    neg_inf = f32(-1e9)

    # ---- encoder: Transformer GraphAttentionBlock stack (VMEM resident) ----
    for (din, dout), (wqkv_ref, wo_ref) in zip(block_dims, blk_refs):
        dh = dout // num_heads
        scale = f32(1.0 / math.sqrt(dh))
        wqkv = wqkv_ref[...]                      # (din+1, 3*dout) bf16
        wo = wo_ref[...]                          # (dout+1, dout)  bf16

        # fused QKV projection (bf16 MXU operands, f32 accumulate)
        qkv = jnp.dot(x.astype(bf16), wqkv[:din, :],
                      preferred_element_type=f32)
        qkv = qkv + wqkv[din:din + 1, :].astype(f32)
        qkv_bf = qkv.astype(bf16)

        acc = jnp.zeros((n, dout), f32)
        for hd in range(num_heads):               # static unroll over heads
            q = qkv_bf[:, hd * dh:(hd + 1) * dh]
            k = qkv_bf[:, dout + hd * dh:dout + (hd + 1) * dh]
            v = qkv_bf[:, 2 * dout + hd * dh:2 * dout + (hd + 1) * dh]
            # q @ k^T without materializing the transpose
            s = lax.dot_general(q, k, (((1,), (1,)), ((), ())),
                                preferred_element_type=f32) * scale
            # invariant: every mask row contains its self-loop
            s = jnp.where(m > 0, s, neg_inf)
            s = s - jnp.max(s, axis=-1, keepdims=True)
            p = jnp.exp(s)
            p = p * pl.reciprocal(jnp.sum(p, axis=-1, keepdims=True),
                                  approx=True)    # attention weights only
            hv = jnp.dot(p.astype(bf16), v, preferred_element_type=f32)
            # per-head output-projection accumulation (no lane-dim concat)
            acc = acc + jnp.dot(hv.astype(bf16), wo[hd * dh:(hd + 1) * dh, :],
                                preferred_element_type=f32)
        x = jnp.maximum(acc + wo[dout:dout + 1, :].astype(f32), 0.0)

    feats = x                                     # (N, latent) f32
    feats_bf = feats.astype(bf16)

    # ---- encode_y: q(y|x) logits, exact softmax, gumbel-softmax sample ----
    wy = wy_ref[...]
    logits = jnp.dot(feats_bf, wy[:latent, :], preferred_element_type=f32)
    logits = logits + wy[latent:latent + 1, :].astype(f32)
    lmax = jnp.max(logits, axis=-1, keepdims=True)
    pe = jnp.exp(logits - lmax)
    prob = pe / jnp.sum(pe, axis=-1, keepdims=True)        # exact (feeds losses)

    gl = (logits + gumbel_ref[0]) * f32(inv_temp)
    gmax = jnp.max(gl, axis=-1, keepdims=True)
    ge = jnp.exp(gl - gmax)
    y_soft = ge / jnp.sum(ge, axis=-1, keepdims=True)
    if hard:
        # forward value of the straight-through estimator: one_hot(argmax)
        idx = lax.broadcasted_iota(jnp.int32, y_soft.shape, 1)
        mx = jnp.max(y_soft, axis=-1, keepdims=True)
        first = jnp.min(jnp.where(y_soft >= mx, idx, y_dim),
                        axis=-1, keepdims=True)
        y = (idx == first).astype(f32)
    else:
        y = y_soft
    y_bf = y.astype(bf16)

    # ---- encode_z: q(z|x,y) as split matmul (no XLA-side concatenate) -----
    wzx = wzx_ref[...]
    wzy = wzy_ref[...]
    muvar = jnp.dot(feats_bf, wzx[:latent, :], preferred_element_type=f32)
    muvar = muvar + jnp.dot(y_bf, wzy, preferred_element_type=f32)
    muvar = muvar + wzx[latent:latent + 1, :].astype(f32)   # folded bias
    lane = lax.broadcasted_iota(jnp.int32, muvar.shape, 1)
    muvar_sp = jnp.where(lane >= latent,
                         jnp.logaddexp(muvar, 0.0),         # softplus(var half)
                         muvar)
    mu = muvar_sp[:, :latent]
    var = muvar_sp[:, latent:]
    z = mu + jnp.sqrt(var) * eps_ref[0]

    # ---- decode: p(z|y) heads + inner-product graph reconstruction --------
    wyd = wyd_ref[...]
    ydmuvar = jnp.dot(y_bf, wyd[:y_dim, :], preferred_element_type=f32)
    ydmuvar = ydmuvar + wyd[y_dim:y_dim + 1, :].astype(f32)
    lane_d = lax.broadcasted_iota(jnp.int32, ydmuvar.shape, 1)
    ydmuvar_sp = jnp.where(lane_d >= latent,
                           jnp.logaddexp(ydmuvar, 0.0), ydmuvar)

    z_bf = z.astype(bf16)
    sim = lax.dot_general(z_bf, z_bf, (((1,), (1,)), ((), ())),
                          preferred_element_type=f32)
    recon = jax.nn.sigmoid(sim)
    # TODO(synk): if N scales into the thousands, tile the key dim of z@z^T
    # and set vmem_limit_bytes explicitly (v7x has only 64 MiB physical VMEM).

    # ---- lane-dense packed outputs (split in the JAX wrapper) -------------
    zpack_ref[0] = jnp.concatenate([muvar_sp, z], axis=-1)   # [mu|var|z]
    ydec_ref[0] = ydmuvar_sp                                 # [y_mu|y_var]
    cat_ref[0] = jnp.concatenate([logits, prob, y], axis=-1)
    recon_ref[0] = recon


# ----------------------------------------------------------------------------
# Parameter init (bias rows folded into weights, matmul weights in bf16)
# ----------------------------------------------------------------------------

def xavier_normal(key, fan_in, fan_out):
    std = math.sqrt(2.0 / (fan_in + fan_out))
    return jax.random.normal(key, (fan_in, fan_out), dtype=jnp.float32) * std


def init_params(key, in_channels, out_channels, num_heads, y_dim, latent_dim):
    keys = iter(jax.random.split(key, 64))
    blocks = []
    for din, dout in zip(in_channels, out_channels):
        wq = xavier_normal(next(keys), din, dout)
        wk = xavier_normal(next(keys), din, dout)
        wv = xavier_normal(next(keys), din, dout)
        bqkv = jnp.zeros((1, 3 * dout), jnp.float32)
        wqkv_aug = jnp.concatenate(
            [jnp.concatenate([wq, wk, wv], axis=1), bqkv], axis=0
        ).astype(jnp.bfloat16)
        wo = xavier_normal(next(keys), dout, dout)
        bo = jnp.zeros((1, dout), jnp.float32)
        wo_aug = jnp.concatenate([wo, bo], axis=0).astype(jnp.bfloat16)
        blocks.append({"wqkv_aug": wqkv_aug, "wo_aug": wo_aug})

    # q(y|x)
    wy = xavier_normal(next(keys), latent_dim, y_dim)
    by = jnp.zeros((1, y_dim), jnp.float32)
    wy_aug = jnp.concatenate([wy, by], axis=0).astype(jnp.bfloat16)

    # q(z|x,y): Linear over concat([x, y]) -> split into x-part / y-part,
    # bias folded into the x-part (row `latent`, sublane-aligned).
    wmu_x = xavier_normal(next(keys), latent_dim, latent_dim)
    wvar_x = xavier_normal(next(keys), latent_dim, latent_dim)
    wmu_y = xavier_normal(next(keys), y_dim, latent_dim)
    wvar_y = xavier_normal(next(keys), y_dim, latent_dim)
    bz = jnp.zeros((1, 2 * latent_dim), jnp.float32)
    wzx_aug = jnp.concatenate(
        [jnp.concatenate([wmu_x, wvar_x], axis=1), bz], axis=0
    ).astype(jnp.bfloat16)
    wzy = jnp.concatenate([wmu_y, wvar_y], axis=1).astype(jnp.bfloat16)

    # decoder p(z|y) heads
    wymu = xavier_normal(next(keys), y_dim, latent_dim)
    wyvar = xavier_normal(next(keys), y_dim, latent_dim)
    byd = jnp.zeros((1, 2 * latent_dim), jnp.float32)
    wyd_aug = jnp.concatenate(
        [jnp.concatenate([wymu, wyvar], axis=1), byd], axis=0
    ).astype(jnp.bfloat16)

    return {
        "blocks": blocks,
        "wy_aug": wy_aug,
        "wzx_aug": wzx_aug,
        "wzy": wzy,
        "wyd_aug": wyd_aug,
        "block_dims": tuple(zip(in_channels, out_channels)),
        "latent_dim": latent_dim,
        "y_dim": y_dim,
    }


# ----------------------------------------------------------------------------
# Forward wrapper (single pallas_call)
# ----------------------------------------------------------------------------

def vae_forward(params, h, adj_matrix, mask_matrix, noise_key,
                num_heads, temperature=1.0, hard=0):
    # Transformer block_type: attention is masked by mask_matrix; adj_matrix
    # is only consumed by the GCN block type in the reference model.
    del adj_matrix
    B, N, d0 = h.shape
    latent = params["latent_dim"]
    y_dim = params["y_dim"]
    block_dims = params["block_dims"]

    # RNG (independent of kernel outputs) precomputed in plain JAX.
    k1, k2 = jax.random.split(noise_key)
    u = jax.random.uniform(k1, (B, N, y_dim), minval=1e-6, maxval=1.0 - 1e-6)
    gumbel = -jnp.log(-jnp.log(u))
    eps = jax.random.normal(k2, (B, N, latent), dtype=jnp.float32)

    weight_inputs = []
    in_specs = [
        pl.BlockSpec((1, N, d0), lambda b: (b, 0, 0)),
        pl.BlockSpec((1, N, N), lambda b: (b, 0, 0)),
        pl.BlockSpec((1, N, y_dim), lambda b: (b, 0, 0)),
        pl.BlockSpec((1, N, latent), lambda b: (b, 0, 0)),
    ]
    for blk in params["blocks"]:
        for w in (blk["wqkv_aug"], blk["wo_aug"]):
            weight_inputs.append(w)
            in_specs.append(pl.BlockSpec(w.shape, lambda b: (0, 0)))
    for name in ("wy_aug", "wzx_aug", "wzy", "wyd_aug"):
        w = params[name]
        weight_inputs.append(w)
        in_specs.append(pl.BlockSpec(w.shape, lambda b: (0, 0)))

    out_shape = (
        jax.ShapeDtypeStruct((B, N, 3 * latent), jnp.float32),   # mu|var|z
        jax.ShapeDtypeStruct((B, N, 2 * latent), jnp.float32),   # y_mu|y_var
        jax.ShapeDtypeStruct((B, N, 3 * y_dim), jnp.float32),    # logits|prob|y
        jax.ShapeDtypeStruct((B, N, N), jnp.float32),            # recon graph
    )
    out_specs = (
        pl.BlockSpec((1, N, 3 * latent), lambda b: (b, 0, 0)),
        pl.BlockSpec((1, N, 2 * latent), lambda b: (b, 0, 0)),
        pl.BlockSpec((1, N, 3 * y_dim), lambda b: (b, 0, 0)),
        pl.BlockSpec((1, N, N), lambda b: (b, 0, 0)),
    )

    # Advisory cost estimate so XLA can overlap this tiny custom call with
    # the surrounding RNG / glue ops.
    flops = 0
    for din, dout in block_dims:
        dh = dout // num_heads
        flops += 2 * N * din * 3 * dout
        flops += num_heads * (4 * N * N * dh + 2 * N * dh * dout)
    flops += 2 * N * latent * y_dim
    flops += 2 * N * (latent + y_dim) * 2 * latent
    flops += 2 * N * y_dim * 2 * latent
    flops += 2 * N * N * latent
    flops *= B
    transcendentals = B * (len(block_dims) * num_heads * N * N
                           + 4 * N * y_dim + 4 * N * latent + N * N)
    in_bytes = sum(int(a.size) * jnp.dtype(a.dtype).itemsize
                   for a in [h, mask_matrix, gumbel, eps] + weight_inputs)
    out_bytes = sum(math.prod(s.shape) * jnp.dtype(s.dtype).itemsize
                    for s in out_shape)
    cost = pl.CostEstimate(flops=int(flops),
                           transcendentals=int(transcendentals),
                           bytes_accessed=int(in_bytes + out_bytes))

    kernel = functools.partial(
        _vae_fused_kernel,
        block_dims=tuple(block_dims), num_heads=num_heads, y_dim=y_dim,
        latent=latent, inv_temp=1.0 / float(temperature), hard=hard)

    zpack, ydec, catp, recon = pl.pallas_call(
        kernel,
        out_shape=out_shape,
        grid=(B,),
        in_specs=in_specs,
        out_specs=out_specs,
        compiler_params=pltpu.CompilerParams(
            dimension_semantics=("parallel",)),
        cost_estimate=cost,
    )(h, mask_matrix, gumbel, eps, *weight_inputs)

    mu = zpack[..., :latent]
    var = zpack[..., latent:2 * latent]
    z = zpack[..., 2 * latent:]
    y_mu = ydec[..., :latent]
    y_var = ydec[..., latent:]
    logits = catp[..., :y_dim]
    prob = catp[..., y_dim:2 * y_dim]
    y = catp[..., 2 * y_dim:]

    return {
        "mean": mu, "var": var, "gaussian": z,
        "logits": logits, "prob_cat": prob, "categorical": y,
        "y_mean": y_mu, "y_var": y_var, "reconstruct_graph": recon,
    }


# ----------------------------------------------------------------------------
# Main
# ----------------------------------------------------------------------------

if __name__ == "__main__":
    B, N = 2, 8
    num_heads = 4
    y_dim = 6
    latent_dim = 32
    num_blocks = 3
    encoder_in_channels = [16, 32, 32]
    encoder_out_channels = [32, 32, 32]
    assert encoder_out_channels[-1] == latent_dim
    assert len(encoder_in_channels) == len(encoder_out_channels) == num_blocks

    root = jax.random.PRNGKey(0)
    k_param, k_h, k_adj, k_noise = jax.random.split(root, 4)

    params = init_params(k_param, encoder_in_channels, encoder_out_channels,
                         num_heads, y_dim, latent_dim)

    h = jax.random.normal(k_h, (B, N, encoder_in_channels[0]),
                          dtype=jnp.float32)
    adj = (jax.random.uniform(k_adj, (B, N, N)) > 0.5).astype(jnp.float32)
    adj = jnp.maximum(adj, jnp.transpose(adj, (0, 2, 1)))          # symmetric
    eye = jnp.eye(N, dtype=jnp.float32)[None]
    adj_matrix = jnp.minimum(adj + eye, 1.0)                       # self-loops
    mask_matrix = adj_matrix                                       # (B, N, N)

    forward = jax.jit(
        functools.partial(vae_forward, params),
        static_argnames=("num_heads", "temperature", "hard"))

    out = forward(h, adj_matrix, mask_matrix, k_noise,
                  num_heads=num_heads, temperature=1.0, hard=0)
    out = jax.block_until_ready(out)

    # sanity on output shapes / values
    assert out["mean"].shape == (B, N, latent_dim)
    assert out["var"].shape == (B, N, latent_dim)
    assert out["gaussian"].shape == (B, N, latent_dim)
    assert out["logits"].shape == (B, N, y_dim)
    assert out["prob_cat"].shape == (B, N, y_dim)
    assert out["categorical"].shape == (B, N, y_dim)
    assert out["y_mean"].shape == (B, N, latent_dim)
    assert out["y_var"].shape == (B, N, latent_dim)
    assert out["reconstruct_graph"].shape == (B, N, N)
    assert bool(jnp.all(jnp.isfinite(out["reconstruct_graph"])))
    assert bool(jnp.all(jnp.isfinite(out["mean"])))
    assert bool(jnp.all(jnp.isfinite(out["var"])))
    assert bool(jnp.all(out["var"] >= 0))
    assert bool(jnp.allclose(jnp.sum(out["prob_cat"], axis=-1), 1.0,
                             atol=1e-2))

    print("KERNEL_OK")
</pallas_src>

<mosaic_0001>
module attributes {stable_mosaic.version = 11 : i64} {
  func.func @_vae_fused_kernel(%arg0: i32, %arg1: memref<1x8x16xf32, #tpu.memory_space<vmem>>, %arg2: memref<1x8x8xf32, #tpu.memory_space<vmem>>, %arg3: memref<1x8x6xf32, #tpu.memory_space<vmem>>, %arg4: memref<1x8x32xf32, #tpu.memory_space<vmem>>, %arg5: memref<17x96xbf16, #tpu.memory_space<vmem>>, %arg6: memref<33x32xbf16, #tpu.memory_space<vmem>>, %arg7: memref<33x96xbf16, #tpu.memory_space<vmem>>, %arg8: memref<33x32xbf16, #tpu.memory_space<vmem>>, %arg9: memref<33x96xbf16, #tpu.memory_space<vmem>>, %arg10: memref<33x32xbf16, #tpu.memory_space<vmem>>, %arg11: memref<33x6xbf16, #tpu.memory_space<vmem>>, %arg12: memref<33x64xbf16, #tpu.memory_space<vmem>>, %arg13: memref<6x64xbf16, #tpu.memory_space<vmem>>, %arg14: memref<7x64xbf16, #tpu.memory_space<vmem>>, %arg15: memref<1x8x96xf32, #tpu.memory_space<vmem>>, %arg16: memref<1x8x64xf32, #tpu.memory_space<vmem>>, %arg17: memref<1x8x18xf32, #tpu.memory_space<vmem>>, %arg18: memref<1x8x8xf32, #tpu.memory_space<vmem>>) attributes {dimension_semantics = [#tpu.dimension_semantics<parallel>], iteration_bounds = array<i64: 2>, scalar_prefetch = 0 : i64, scratch_operands = 0 : i64, tpu.core_type = #tpu.core_type<tc>, window_params = [{transform_indices = @transform_0, window_bounds = array<i64: 1, 8, 16>}, {transform_indices = @transform_1, window_bounds = array<i64: 1, 8, 8>}, {transform_indices = @transform_2, window_bounds = array<i64: 1, 8, 6>}, {transform_indices = @transform_3, window_bounds = array<i64: 1, 8, 32>}, {pipeline_mode = #tpu.pipeline_mode<synchronous>, transform_indices = @transform_4, window_bounds = array<i64: 17, 96>}, {pipeline_mode = #tpu.pipeline_mode<synchronous>, transform_indices = @transform_5, window_bounds = array<i64: 33, 32>}, {pipeline_mode = #tpu.pipeline_mode<synchronous>, transform_indices = @transform_6, window_bounds = array<i64: 33, 96>}, {pipeline_mode = #tpu.pipeline_mode<synchronous>, transform_indices = @transform_7, window_bounds = array<i64: 33, 32>}, {pipeline_mode = #tpu.pipeline_mode<synchronous>, transform_indices = @transform_8, window_bounds = array<i64: 33, 96>}, {pipeline_mode = #tpu.pipeline_mode<synchronous>, transform_indices = @transform_9, window_bounds = array<i64: 33, 32>}, {pipeline_mode = #tpu.pipeline_mode<synchronous>, transform_indices = @transform_10, window_bounds = array<i64: 33, 6>}, {pipeline_mode = #tpu.pipeline_mode<synchronous>, transform_indices = @transform_11, window_bounds = array<i64: 33, 64>}, {pipeline_mode = #tpu.pipeline_mode<synchronous>, transform_indices = @transform_12, window_bounds = array<i64: 6, 64>}, {pipeline_mode = #tpu.pipeline_mode<synchronous>, transform_indices = @transform_13, window_bounds = array<i64: 7, 64>}, {transform_indices = @transform_14, window_bounds = array<i64: 1, 8, 96>}, {transform_indices = @transform_15, window_bounds = array<i64: 1, 8, 64>}, {transform_indices = @transform_16, window_bounds = array<i64: 1, 8, 18>}, {transform_indices = @transform_17, window_bounds = array<i64: 1, 8, 8>}]} {
    %c0 = arith.constant 0 : index
    %c0_0 = arith.constant 0 : index
    %c0_1 = arith.constant 0 : index
    %0 = vector.load %arg1[%c0, %c0_0, %c0_1] : memref<1x8x16xf32, #tpu.memory_space<vmem>>, vector<1x8x16xf32>
    %1 = vector.shape_cast %0 : vector<1x8x16xf32> to vector<8x16xf32>
    %c0_2 = arith.constant 0 : index
    %c0_3 = arith.constant 0 : index
    %c0_4 = arith.constant 0 : index
    %2 = vector.load %arg2[%c0_2, %c0_3, %c0_4] : memref<1x8x8xf32, #tpu.memory_space<vmem>>, vector<1x8x8xf32>
    %3 = vector.shape_cast %2 : vector<1x8x8xf32> to vector<8x8xf32>
    %c0_5 = arith.constant 0 : index
    %c0_6 = arith.constant 0 : index
    %4 = vector.load %arg5[%c0_5, %c0_6] : memref<17x96xbf16, #tpu.memory_space<vmem>>, vector<17x96xbf16>
    %c0_7 = arith.constant 0 : index
    %c0_8 = arith.constant 0 : index
    %5 = vector.load %arg6[%c0_7, %c0_8] : memref<33x32xbf16, #tpu.memory_space<vmem>>, vector<33x32xbf16>
    %6 = arith.truncf %1 : vector<8x16xf32> to vector<8x16xbf16>
    %7 = vector.extract_strided_slice %4 {offsets = [0, 0], sizes = [16, 96], strides = [1, 1]} : vector<17x96xbf16> to vector<16x96xbf16>
    %cst = arith.constant dense<0.000000e+00> : vector<8x96xf32>
    %8 = tpu.matmul %6, %7, %cst {dimension_numbers = #tpu.dot_dimension_numbers<[1], [0], [0], [1], [0, 0, 1, 1], [], []>} : vector<8x16xbf16>, vector<16x96xbf16>, vector<8x96xf32> -> vector<8x96xf32>
    %9 = vector.extract_strided_slice %4 {offsets = [16, 0], sizes = [1, 96], strides = [1, 1]} : vector<17x96xbf16> to vector<1x96xbf16>
    %10 = arith.extf %9 : vector<1x96xbf16> to vector<1x96xf32>
    %11 = vector.broadcast %10 : vector<1x96xf32> to vector<8x96xf32>
    %12 = arith.addf %8, %11 : vector<8x96xf32>
    %13 = arith.truncf %12 : vector<8x96xf32> to vector<8x96xbf16>
    %cst_9 = arith.constant 0.000000e+00 : f32
    %14 = vector.broadcast %cst_9 : f32 to vector<8x32xf32>
    %15 = vector.extract_strided_slice %13 {offsets = [0, 0], sizes = [8, 8], strides = [1, 1]} : vector<8x96xbf16> to vector<8x8xbf16>
    %16 = vector.extract_strided_slice %13 {offsets = [0, 32], sizes = [8, 8], strides = [1, 1]} : vector<8x96xbf16> to vector<8x8xbf16>
    %17 = vector.extract_strided_slice %13 {offsets = [0, 64], sizes = [8, 8], strides = [1, 1]} : vector<8x96xbf16> to vector<8x8xbf16>
    %cst_10 = arith.constant dense<0.000000e+00> : vector<8x8xf32>
    %18 = tpu.matmul %15, %16, %cst_10 {dimension_numbers = #tpu.dot_dimension_numbers<[1], [1], [0], [0], [0, 0, 1, 0], [], []>} : vector<8x8xbf16>, vector<8x8xbf16>, vector<8x8xf32> -> vector<8x8xf32>
    %cst_11 = arith.constant 0.353553385 : f32
    %19 = vector.broadcast %cst_11 : f32 to vector<8x8xf32>
    %20 = arith.mulf %18, %19 : vector<8x8xf32>
    %cst_12 = arith.constant 0.000000e+00 : f32
    %21 = vector.broadcast %cst_12 : f32 to vector<8x8xf32>
    %22 = arith.cmpf ogt, %3, %21 : vector<8x8xf32>
    %cst_13 = arith.constant -1.000000e+09 : f32
    %23 = vector.broadcast %cst_13 : f32 to vector<8x8xf32>
    %24 = arith.select %22, %20, %23 : vector<8x8xi1>, vector<8x8xf32>
    %cst_14 = arith.constant dense<0xFF800000> : vector<8xf32>
    %25 = vector.multi_reduction <maximumf>, %24, %cst_14 [1] : vector<8x8xf32> to vector<8xf32>
    %26 = vector.shape_cast %25 : vector<8xf32> to vector<8x1xf32>
    %27 = vector.broadcast %26 : vector<8x1xf32> to vector<8x8xf32>
    %28 = arith.subf %24, %27 : vector<8x8xf32>
    %29 = math.exp %28 : vector<8x8xf32>
    %cst_15 = arith.constant dense<0.000000e+00> : vector<8xf32>
    %30 = vector.multi_reduction <add>, %29, %cst_15 [1] : vector<8x8xf32> to vector<8xf32>
    %31 = vector.shape_cast %30 : vector<8xf32> to vector<8x1xf32>
    %32 = tpu.reciprocal %31 {approx = true} : vector<8x1xf32> -> vector<8x1xf32>
    %33 = vector.broadcast %32 : vector<8x1xf32> to vector<8x8xf32>
    %34 = arith.mulf %29, %33 : vector<8x8xf32>
    %35 = arith.truncf %34 : vector<8x8xf32> to vector<8x8xbf16>
    %cst_16 = arith.constant dense<0.000000e+00> : vector<8x8xf32>
    %36 = tpu.matmul %35, %17, %cst_16 {dimension_numbers = #tpu.dot_dimension_numbers<[1], [0], [0], [1], [0, 0, 1, 1], [], []>} : vector<8x8xbf16>, vector<8x8xbf16>, vector<8x8xf32> -> vector<8x8xf32>
    %37 = arith.truncf %36 : vector<8x8xf32> to vector<8x8xbf16>
    %38 = vector.extract_strided_slice %5 {offsets = [0, 0], sizes = [8, 32], strides = [1, 1]} : vector<33x32xbf16> to vector<8x32xbf16>
    %cst_17 = arith.constant dense<0.000000e+00> : vector<8x32xf32>
    %39 = tpu.matmul %37, %38, %cst_17 {dimension_numbers = #tpu.dot_dimension_numbers<[1], [0], [0], [1], [0, 0, 1, 1], [], []>} : vector<8x8xbf16>, vector<8x32xbf16>, vector<8x32xf32> -> vector<8x32xf32>
    %40 = arith.addf %14, %39 : vector<8x32xf32>
    %41 = vector.extract_strided_slice %13 {offsets = [0, 8], sizes = [8, 8], strides = [1, 1]} : vector<8x96xbf16> to vector<8x8xbf16>
    %42 = vector.extract_strided_slice %13 {offsets = [0, 40], sizes = [8, 8], strides = [1, 1]} : vector<8x96xbf16> to vector<8x8xbf16>
    %43 = vector.extract_strided_slice %13 {offsets = [0, 72], sizes = [8, 8], strides = [1, 1]} : vector<8x96xbf16> to vector<8x8xbf16>
    %cst_18 = arith.constant dense<0.000000e+00> : vector<8x8xf32>
    %44 = tpu.matmul %41, %42, %cst_18 {dimension_numbers = #tpu.dot_dimension_numbers<[1], [1], [0], [0], [0, 0, 1, 0], [], []>} : vector<8x8xbf16>, vector<8x8xbf16>, vector<8x8xf32> -> vector<8x8xf32>
    %cst_19 = arith.constant 0.353553385 : f32
    %45 = vector.broadcast %cst_19 : f32 to vector<8x8xf32>
    %46 = arith.mulf %44, %45 : vector<8x8xf32>
    %cst_20 = arith.constant 0.000000e+00 : f32
    %47 = vector.broadcast %cst_20 : f32 to vector<8x8xf32>
    %48 = arith.cmpf ogt, %3, %47 : vector<8x8xf32>
    %cst_21 = arith.constant -1.000000e+09 : f32
    %49 = vector.broadcast %cst_21 : f32 to vector<8x8xf32>
    %50 = arith.select %48, %46, %49 : vector<8x8xi1>, vector<8x8xf32>
    %cst_22 = arith.constant dense<0xFF800000> : vector<8xf32>
    %51 = vector.multi_reduction <maximumf>, %50, %cst_22 [1] : vector<8x8xf32> to vector<8xf32>
    %52 = vector.shape_cast %51 : vector<8xf32> to vector<8x1xf32>
    %53 = vector.broadcast %52 : vector<8x1xf32> to vector<8x8xf32>
    %54 = arith.subf %50, %53 : vector<8x8xf32>
    %55 = math.exp %54 : vector<8x8xf32>
    %cst_23 = arith.constant dense<0.000000e+00> : vector<8xf32>
    %56 = vector.multi_reduction <add>, %55, %cst_23 [1] : vector<8x8xf32> to vector<8xf32>
    %57 = vector.shape_cast %56 : vector<8xf32> to vector<8x1xf32>
    %58 = tpu.reciprocal %57 {approx = true} : vector<8x1xf32> -> vector<8x1xf32>
    %59 = vector.broadcast %58 : vector<8x1xf32> to vector<8x8xf32>
    %60 = arith.mulf %55, %59 : vector<8x8xf32>
    %61 = arith.truncf %60 : vector<8x8xf32> to vector<8x8xbf16>
    %cst_24 = arith.constant dense<0.000000e+00> : vector<8x8xf32>
    %62 = tpu.matmul %61, %43, %cst_24 {dimension_numbers = #tpu.dot_dimension_numbers<[1], [0], [0], [1], [0, 0, 1, 1], [], []>} : vector<8x8xbf16>, vector<8x8xbf16>, vector<8x8xf32> -> vector<8x8xf32>
    %63 = arith.truncf %62 : vector<8x8xf32> to vector<8x8xbf16>
    %64 = vector.extract_strided_slice %5 {offsets = [8, 0], sizes = [8, 32], strides = [1, 1]} : vector<33x32xbf16> to vector<8x32xbf16>
    %cst_25 = arith.constant dense<0.000000e+00> : vector<8x32xf32>
    %65 = tpu.matmul %63, %64, %cst_25 {dimension_numbers = #tpu.dot_dimension_numbers<[1], [0], [0], [1], [0, 0, 1, 1], [], []>} : vector<8x8xbf16>, vector<8x32xbf16>, vector<8x32xf32> -> vector<8x32xf32>
    %66 = arith.addf %40, %65 : vector<8x32xf32>
    %67 = vector.extract_strided_slice %13 {offsets = [0, 16], sizes = [8, 8], strides = [1, 1]} : vector<8x96xbf16> to vector<8x8xbf16>
    %68 = vector.extract_strided_slice %13 {offsets = [0, 48], sizes = [8, 8], strides = [1, 1]} : vector<8x96xbf16> to vector<8x8xbf16>
    %69 = vector.extract_strided_slice %13 {offsets = [0, 80], sizes = [8, 8], strides = [1, 1]} : vector<8x96xbf16> to vector<8x8xbf16>
    %cst_26 = arith.constant dense<0.000000e+00> : vector<8x8xf32>
    %70 = tpu.matmul %67, %68, %cst_26 {dimension_numbers = #tpu.dot_dimension_numbers<[1], [1], [0], [0], [0, 0, 1, 0], [], []>} : vector<8x8xbf16>, vector<8x8xbf16>, vector<8x8xf32> -> vector<8x8xf32>
    %cst_27 = arith.constant 0.353553385 : f32
    %71 = vector.broadcast %cst_27 : f32 to vector<8x8xf32>
    %72 = arith.mulf %70, %71 : vector<8x8xf32>
    %cst_28 = arith.constant 0.000000e+00 : f32
    %73 = vector.broadcast %cst_28 : f32 to vector<8x8xf32>
    %74 = arith.cmpf ogt, %3, %73 : vector<8x8xf32>
    %cst_29 = arith.constant -1.000000e+09 : f32
    %75 = vector.broadcast %cst_29 : f32 to vector<8x8xf32>
    %76 = arith.select %74, %72, %75 : vector<8x8xi1>, vector<8x8xf32>
    %cst_30 = arith.constant dense<0xFF800000> : vector<8xf32>
    %77 = vector.multi_reduction <maximumf>, %76, %cst_30 [1] : vector<8x8xf32> to vector<8xf32>
    %78 = vector.shape_cast %77 : vector<8xf32> to vector<8x1xf32>
    %79 = vector.broadcast %78 : vector<8x1xf32> to vector<8x8xf32>
    %80 = arith.subf %76, %79 : vector<8x8xf32>
    %81 = math.exp %80 : vector<8x8xf32>
    %cst_31 = arith.constant dense<0.000000e+00> : vector<8xf32>
    %82 = vector.multi_reduction <add>, %81, %cst_31 [1] : vector<8x8xf32> to vector<8xf32>
    %83 = vector.shape_cast %82 : vector<8xf32> to vector<8x1xf32>
    %84 = tpu.reciprocal %83 {approx = true} : vector<8x1xf32> -> vector<8x1xf32>
    %85 = vector.broadcast %84 : vector<8x1xf32> to vector<8x8xf32>
    %86 = arith.mulf %81, %85 : vector<8x8xf32>
    %87 = arith.truncf %86 : vector<8x8xf32> to vector<8x8xbf16>
    %cst_32 = arith.constant dense<0.000000e+00> : vector<8x8xf32>
    %88 = tpu.matmul %87, %69, %cst_32 {dimension_numbers = #tpu.dot_dimension_numbers<[1], [0], [0], [1], [0, 0, 1, 1], [], []>} : vector<8x8xbf16>, vector<8x8xbf16>, vector<8x8xf32> -> vector<8x8xf32>
    %89 = arith.truncf %88 : vector<8x8xf32> to vector<8x8xbf16>
    %90 = vector.extract_strided_slice %5 {offsets = [16, 0], sizes = [8, 32], strides = [1, 1]} : vector<33x32xbf16> to vector<8x32xbf16>
    %cst_33 = arith.constant dense<0.000000e+00> : vector<8x32xf32>
    %91 = tpu.matmul %89, %90, %cst_33 {dimension_numbers = #tpu.dot_dimension_numbers<[1], [0], [0], [1], [0, 0, 1, 1], [], []>} : vector<8x8xbf16>, vector<8x32xbf16>, vector<8x32xf32> -> vector<8x32xf32>
    %92 = arith.addf %66, %91 : vector<8x32xf32>
    %93 = vector.extract_strided_slice %13 {offsets = [0, 24], sizes = [8, 8], strides = [1, 1]} : vector<8x96xbf16> to vector<8x8xbf16>
    %94 = vector.extract_strided_slice %13 {offsets = [0, 56], sizes = [8, 8], strides = [1, 1]} : vector<8x96xbf16> to vector<8x8xbf16>
    %95 = vector.extract_strided_slice %13 {offsets = [0, 88], sizes = [8, 8], strides = [1, 1]} : vector<8x96xbf16> to vector<8x8xbf16>
    %cst_34 = arith.constant dense<0.000000e+00> : vector<8x8xf32>
    %96 = tpu.matmul %93, %94, %cst_34 {dimension_numbers = #tpu.dot_dimension_numbers<[1], [1], [0], [0], [0, 0, 1, 0], [], []>} : vector<8x8xbf16>, vector<8x8xbf16>, vector<8x8xf32> -> vector<8x8xf32>
    %cst_35 = arith.constant 0.353553385 : f32
    %97 = vector.broadcast %cst_35 : f32 to vector<8x8xf32>
    %98 = arith.mulf %96, %97 : vector<8x8xf32>
    %cst_36 = arith.constant 0.000000e+00 : f32
    %99 = vector.broadcast %cst_36 : f32 to vector<8x8xf32>
    %100 = arith.cmpf ogt, %3, %99 : vector<8x8xf32>
    %cst_37 = arith.constant -1.000000e+09 : f32
    %101 = vector.broadcast %cst_37 : f32 to vector<8x8xf32>
    %102 = arith.select %100, %98, %101 : vector<8x8xi1>, vector<8x8xf32>
    %cst_38 = arith.constant dense<0xFF800000> : vector<8xf32>
    %103 = vector.multi_reduction <maximumf>, %102, %cst_38 [1] : vector<8x8xf32> to vector<8xf32>
    %104 = vector.shape_cast %103 : vector<8xf32> to vector<8x1xf32>
    %105 = vector.broadcast %104 : vector<8x1xf32> to vector<8x8xf32>
    %106 = arith.subf %102, %105 : vector<8x8xf32>
    %107 = math.exp %106 : vector<8x8xf32>
    %cst_39 = arith.constant dense<0.000000e+00> : vector<8xf32>
    %108 = vector.multi_reduction <add>, %107, %cst_39 [1] : vector<8x8xf32> to vector<8xf32>
    %109 = vector.shape_cast %108 : vector<8xf32> to vector<8x1xf32>
    %110 = tpu.reciprocal %109 {approx = true} : vector<8x1xf32> -> vector<8x1xf32>
    %111 = vector.broadcast %110 : vector<8x1xf32> to vector<8x8xf32>
    %112 = arith.mulf %107, %111 : vector<8x8xf32>
    %113 = arith.truncf %112 : vector<8x8xf32> to vector<8x8xbf16>
    %cst_40 = arith.constant dense<0.000000e+00> : vector<8x8xf32>
    %114 = tpu.matmul %113, %95, %cst_40 {dimension_numbers = #tpu.dot_dimension_numbers<[1], [0], [0], [1], [0, 0, 1, 1], [], []>} : vector<8x8xbf16>, vector<8x8xbf16>, vector<8x8xf32> -> vector<8x8xf32>
    %115 = arith.truncf %114 : vector<8x8xf32> to vector<8x8xbf16>
    %116 = vector.extract_strided_slice %5 {offsets = [24, 0], sizes = [8, 32], strides = [1, 1]} : vector<33x32xbf16> to vector<8x32xbf16>
    %cst_41 = arith.constant dense<0.000000e+00> : vector<8x32xf32>
    %117 = tpu.matmul %115, %116, %cst_41 {dimension_numbers = #tpu.dot_dimension_numbers<[1], [0], [0], [1], [0, 0, 1, 1], [], []>} : vector<8x8xbf16>, vector<8x32xbf16>, vector<8x32xf32> -> vector<8x32xf32>
    %118 = arith.addf %92, %117 : vector<8x32xf32>
    %119 = vector.extract_strided_slice %5 {offsets = [32, 0], sizes = [1, 32], strides = [1, 1]} : vector<33x32xbf16> to vector<1x32xbf16>
    %120 = arith.extf %119 : vector<1x32xbf16> to vector<1x32xf32>
    %121 = vector.broadcast %120 : vector<1x32xf32> to vector<8x32xf32>
    %122 = arith.addf %118, %121 : vector<8x32xf32>
    %cst_42 = arith.constant 0.000000e+00 : f32
    %123 = vector.broadcast %cst_42 : f32 to vector<8x32xf32>
    %124 = arith.maximumf %122, %123 : vector<8x32xf32>
    %c0_43 = arith.constant 0 : index
    %c0_44 = arith.constant 0 : index
    %125 = vector.load %arg7[%c0_43, %c0_44] : memref<33x96xbf16, #tpu.memory_space<vmem>>, vector<33x96xbf16>
    %c0_45 = arith.constant 0 : index
    %c0_46 = arith.constant 0 : index
    %126 = vector.load %arg8[%c0_45, %c0_46] : memref<33x32xbf16, #tpu.memory_space<vmem>>, vector<33x32xbf16>
    %127 = arith.truncf %124 : vector<8x32xf32> to vector<8x32xbf16>
    %128 = vector.extract_strided_slice %125 {offsets = [0, 0], sizes = [32, 96], strides = [1, 1]} : vector<33x96xbf16> to vector<32x96xbf16>
    %cst_47 = arith.constant dense<0.000000e+00> : vector<8x96xf32>
    %129 = tpu.matmul %127, %128, %cst_47 {dimension_numbers = #tpu.dot_dimension_numbers<[1], [0], [0], [1], [0, 0, 1, 1], [], []>} : vector<8x32xbf16>, vector<32x96xbf16>, vector<8x96xf32> -> vector<8x96xf32>
    %130 = vector.extract_strided_slice %125 {offsets = [32, 0], sizes = [1, 96], strides = [1, 1]} : vector<33x96xbf16> to vector<1x96xbf16>
    %131 = arith.extf %130 : vector<1x96xbf16> to vector<1x96xf32>
    %132 = vector.broadcast %131 : vector<1x96xf32> to vector<8x96xf32>
    %133 = arith.addf %129, %132 : vector<8x96xf32>
    %134 = arith.truncf %133 : vector<8x96xf32> to vector<8x96xbf16>
    %cst_48 = arith.constant 0.000000e+00 : f32
    %135 = vector.broadcast %cst_48 : f32 to vector<8x32xf32>
    %136 = vector.extract_strided_slice %134 {offsets = [0, 0], sizes = [8, 8], strides = [1, 1]} : vector<8x96xbf16> to vector<8x8xbf16>
    %137 = vector.extract_strided_slice %134 {offsets = [0, 32], sizes = [8, 8], strides = [1, 1]} : vector<8x96xbf16> to vector<8x8xbf16>
    %138 = vector.extract_strided_slice %134 {offsets = [0, 64], sizes = [8, 8], strides = [1, 1]} : vector<8x96xbf16> to vector<8x8xbf16>
    %cst_49 = arith.constant dense<0.000000e+00> : vector<8x8xf32>
    %139 = tpu.matmul %136, %137, %cst_49 {dimension_numbers = #tpu.dot_dimension_numbers<[1], [1], [0], [0], [0, 0, 1, 0], [], []>} : vector<8x8xbf16>, vector<8x8xbf16>, vector<8x8xf32> -> vector<8x8xf32>
    %cst_50 = arith.constant 0.353553385 : f32
    %140 = vector.broadcast %cst_50 : f32 to vector<8x8xf32>
    %141 = arith.mulf %139, %140 : vector<8x8xf32>
    %cst_51 = arith.constant 0.000000e+00 : f32
    %142 = vector.broadcast %cst_51 : f32 to vector<8x8xf32>
    %143 = arith.cmpf ogt, %3, %142 : vector<8x8xf32>
    %cst_52 = arith.constant -1.000000e+09 : f32
    %144 = vector.broadcast %cst_52 : f32 to vector<8x8xf32>
    %145 = arith.select %143, %141, %144 : vector<8x8xi1>, vector<8x8xf32>
    %cst_53 = arith.constant dense<0xFF800000> : vector<8xf32>
    %146 = vector.multi_reduction <maximumf>, %145, %cst_53 [1] : vector<8x8xf32> to vector<8xf32>
    %147 = vector.shape_cast %146 : vector<8xf32> to vector<8x1xf32>
    %148 = vector.broadcast %147 : vector<8x1xf32> to vector<8x8xf32>
    %149 = arith.subf %145, %148 : vector<8x8xf32>
    %150 = math.exp %149 : vector<8x8xf32>
    %cst_54 = arith.constant dense<0.000000e+00> : vector<8xf32>
    %151 = vector.multi_reduction <add>, %150, %cst_54 [1] : vector<8x8xf32> to vector<8xf32>
    %152 = vector.shape_cast %151 : vector<8xf32> to vector<8x1xf32>
    %153 = tpu.reciprocal %152 {approx = true} : vector<8x1xf32> -> vector<8x1xf32>
    %154 = vector.broadcast %153 : vector<8x1xf32> to vector<8x8xf32>
    %155 = arith.mulf %150, %154 : vector<8x8xf32>
    %156 = arith.truncf %155 : vector<8x8xf32> to vector<8x8xbf16>
    %cst_55 = arith.constant dense<0.000000e+00> : vector<8x8xf32>
    %157 = tpu.matmul %156, %138, %cst_55 {dimension_numbers = #tpu.dot_dimension_numbers<[1], [0], [0], [1], [0, 0, 1, 1], [], []>} : vector<8x8xbf16>, vector<8x8xbf16>, vector<8x8xf32> -> vector<8x8xf32>
    %158 = arith.truncf %157 : vector<8x8xf32> to vector<8x8xbf16>
    %159 = vector.extract_strided_slice %126 {offsets = [0, 0], sizes = [8, 32], strides = [1, 1]} : vector<33x32xbf16> to vector<8x32xbf16>
    %cst_56 = arith.constant dense<0.000000e+00> : vector<8x32xf32>
    %160 = tpu.matmul %158, %159, %cst_56 {dimension_numbers = #tpu.dot_dimension_numbers<[1], [0], [0], [1], [0, 0, 1, 1], [], []>} : vector<8x8xbf16>, vector<8x32xbf16>, vector<8x32xf32> -> vector<8x32xf32>
    %161 = arith.addf %135, %160 : vector<8x32xf32>
    %162 = vector.extract_strided_slice %134 {offsets = [0, 8], sizes = [8, 8], strides = [1, 1]} : vector<8x96xbf16> to vector<8x8xbf16>
    %163 = vector.extract_strided_slice %134 {offsets = [0, 40], sizes = [8, 8], strides = [1, 1]} : vector<8x96xbf16> to vector<8x8xbf16>
    %164 = vector.extract_strided_slice %134 {offsets = [0, 72], sizes = [8, 8], strides = [1, 1]} : vector<8x96xbf16> to vector<8x8xbf16>
    %cst_57 = arith.constant dense<0.000000e+00> : vector<8x8xf32>
    %165 = tpu.matmul %162, %163, %cst_57 {dimension_numbers = #tpu.dot_dimension_numbers<[1], [1], [0], [0], [0, 0, 1, 0], [], []>} : vector<8x8xbf16>, vector<8x8xbf16>, vector<8x8xf32> -> vector<8x8xf32>
    %cst_58 = arith.constant 0.353553385 : f32
    %166 = vector.broadcast %cst_58 : f32 to vector<8x8xf32>
    %167 = arith.mulf %165, %166 : vector<8x8xf32>
    %cst_59 = arith.constant 0.000000e+00 : f32
    %168 = vector.broadcast %cst_59 : f32 to vector<8x8xf32>
    %169 = arith.cmpf ogt, %3, %168 : vector<8x8xf32>
    %cst_60 = arith.constant -1.000000e+09 : f32
    %170 = vector.broadcast %cst_60 : f32 to vector<8x8xf32>
    %171 = arith.select %169, %167, %170 : vector<8x8xi1>, vector<8x8xf32>
    %cst_61 = arith.constant dense<0xFF800000> : vector<8xf32>
    %172 = vector.multi_reduction <maximumf>, %171, %cst_61 [1] : vector<8x8xf32> to vector<8xf32>
    %173 = vector.shape_cast %172 : vector<8xf32> to vector<8x1xf32>
    %174 = vector.broadcast %173 : vector<8x1xf32> to vector<8x8xf32>
    %175 = arith.subf %171, %174 : vector<8x8xf32>
    %176 = math.exp %175 : vector<8x8xf32>
    %cst_62 = arith.constant dense<0.000000e+00> : vector<8xf32>
    %177 = vector.multi_reduction <add>, %176, %cst_62 [1] : vector<8x8xf32> to vector<8xf32>
    %178 = vector.shape_cast %177 : vector<8xf32> to vector<8x1xf32>
    %179 = tpu.reciprocal %178 {approx = true} : vector<8x1xf32> -> vector<8x1xf32>
    %180 = vector.broadcast %179 : vector<8x1xf32> to vector<8x8xf32>
    %181 = arith.mulf %176, %180 : vector<8x8xf32>
    %182 = arith.truncf %181 : vector<8x8xf32> to vector<8x8xbf16>
    %cst_63 = arith.constant dense<0.000000e+00> : vector<8x8xf32>
    %183 = tpu.matmul %182, %164, %cst_63 {dimension_numbers = #tpu.dot_dimension_numbers<[1], [0], [0], [1], [0, 0, 1, 1], [], []>} : vector<8x8xbf16>, vector<8x8xbf16>, vector<8x8xf32> -> vector<8x8xf32>
    %184 = arith.truncf %183 : vector<8x8xf32> to vector<8x8xbf16>
    %185 = vector.extract_strided_slice %126 {offsets = [8, 0], sizes = [8, 32], strides = [1, 1]} : vector<33x32xbf16> to vector<8x32xbf16>
    %cst_64 = arith.constant dense<0.000000e+00> : vector<8x32xf32>
    %186 = tpu.matmul %184, %185, %cst_64 {dimension_numbers = #tpu.dot_dimension_numbers<[1], [0], [0], [1], [0, 0, 1, 1], [], []>} : vector<8x8xbf16>, vector<8x32xbf16>, vector<8x32xf32> -> vector<8x32xf32>
    %187 = arith.addf %161, %186 : vector<8x32xf32>
    %188 = vector.extract_strided_slice %134 {offsets = [0, 16], sizes = [8, 8], strides = [1, 1]} : vector<8x96xbf16> to vector<8x8xbf16>
    %189 = vector.extract_strided_slice %134 {offsets = [0, 48], sizes = [8, 8], strides = [1, 1]} : vector<8x96xbf16> to vector<8x8xbf16>
    %190 = vector.extract_strided_slice %134 {offsets = [0, 80], sizes = [8, 8], strides = [1, 1]} : vector<8x96xbf16> to vector<8x8xbf16>
    %cst_65 = arith.constant dense<0.000000e+00> : vector<8x8xf32>
    %191 = tpu.matmul %188, %189, %cst_65 {dimension_numbers = #tpu.dot_dimension_numbers<[1], [1], [0], [0], [0, 0, 1, 0], [], []>} : vector<8x8xbf16>, vector<8x8xbf16>, vector<8x8xf32> -> vector<8x8xf32>
    %cst_66 = arith.constant 0.353553385 : f32
    %192 = vector.broadcast %cst_66 : f32 to vector<8x8xf32>
    %193 = arith.mulf %191, %192 : vector<8x8xf32>
    %cst_67 = arith.constant 0.000000e+00 : f32
    %194 = vector.broadcast %cst_67 : f32 to vector<8x8xf32>
    %195 = arith.cmpf ogt, %3, %194 : vector<8x8xf32>
    %cst_68 = arith.constant -1.000000e+09 : f32
    %196 = vector.broadcast %cst_68 : f32 to vector<8x8xf32>
    %197 = arith.select %195, %193, %196 : vector<8x8xi1>, vector<8x8xf32>
    %cst_69 = arith.constant dense<0xFF800000> : vector<8xf32>
    %198 = vector.multi_reduction <maximumf>, %197, %cst_69 [1] : vector<8x8xf32> to vector<8xf32>
    %199 = vector.shape_cast %198 : vector<8xf32> to vector<8x1xf32>
    %200 = vector.broadcast %199 : vector<8x1xf32> to vector<8x8xf32>
    %201 = arith.subf %197, %200 : vector<8x8xf32>
    %202 = math.exp %201 : vector<8x8xf32>
    %cst_70 = arith.constant dense<0.000000e+00> : vector<8xf32>
    %203 = vector.multi_reduction <add>, %202, %cst_70 [1] : vector<8x8xf32> to vector<8xf32>
    %204 = vector.shape_cast %203 : vector<8xf32> to vector<8x1xf32>
    %205 = tpu.reciprocal %204 {approx = true} : vector<8x1xf32> -> vector<8x1xf32>
    %206 = vector.broadcast %205 : vector<8x1xf32> to vector<8x8xf32>
    %207 = arith.mulf %202, %206 : vector<8x8xf32>
    %208 = arith.truncf %207 : vector<8x8xf32> to vector<8x8xbf16>
    %cst_71 = arith.constant dense<0.000000e+00> : vector<8x8xf32>
    %209 = tpu.matmul %208, %190, %cst_71 {dimension_numbers = #tpu.dot_dimension_numbers<[1], [0], [0], [1], [0, 0, 1, 1], [], []>} : vector<8x8xbf16>, vector<8x8xbf16>, vector<8x8xf32> -> vector<8x8xf32>
    %210 = arith.truncf %209 : vector<8x8xf32> to vector<8x8xbf16>
    %211 = vector.extract_strided_slice %126 {offsets = [16, 0], sizes = [8, 32], strides = [1, 1]} : vector<33x32xbf16> to vector<8x32xbf16>
    %cst_72 = arith.constant dense<0.000000e+00> : vector<8x32xf32>
    %212 = tpu.matmul %210, %211, %cst_72 {dimension_numbers = #tpu.dot_dimension_numbers<[1], [0], [0], [1], [0, 0, 1, 1], [], []>} : vector<8x8xbf16>, vector<8x32xbf16>, vector<8x32xf32> -> vector<8x32xf32>
    %213 = arith.addf %187, %212 : vector<8x32xf32>
    %214 = vector.extract_strided_slice %134 {offsets = [0, 24], sizes = [8, 8], strides = [1, 1]} : vector<8x96xbf16> to vector<8x8xbf16>
    %215 = vector.extract_strided_slice %134 {offsets = [0, 56], sizes = [8, 8], strides = [1, 1]} : vector<8x96xbf16> to vector<8x8xbf16>
    %216 = vector.extract_strided_slice %134 {offsets = [0, 88], sizes = [8, 8], strides = [1, 1]} : vector<8x96xbf16> to vector<8x8xbf16>
    %cst_73 = arith.constant dense<0.000000e+00> : vector<8x8xf32>
    %217 = tpu.matmul %214, %215, %cst_73 {dimension_numbers = #tpu.dot_dimension_numbers<[1], [1], [0], [0], [0, 0, 1, 0], [], []>} : vector<8x8xbf16>, vector<8x8xbf16>, vector<8x8xf32> -> vector<8x8xf32>
    %cst_74 = arith.constant 0.353553385 : f32
    %218 = vector.broadcast %cst_74 : f32 to vector<8x8xf32>
    %219 = arith.mulf %217, %218 : vector<8x8xf32>
    %cst_75 = arith.constant 0.000000e+00 : f32
    %220 = vector.broadcast %cst_75 : f32 to vector<8x8xf32>
    %221 = arith.cmpf ogt, %3, %220 : vector<8x8xf32>
    %cst_76 = arith.constant -1.000000e+09 : f32
    %222 = vector.broadcast %cst_76 : f32 to vector<8x8xf32>
    %223 = arith.select %221, %219, %222 : vector<8x8xi1>, vector<8x8xf32>
    %cst_77 = arith.constant dense<0xFF800000> : vector<8xf32>
    %224 = vector.multi_reduction <maximumf>, %223, %cst_77 [1] : vector<8x8xf32> to vector<8xf32>
    %225 = vector.shape_cast %224 : vector<8xf32> to vector<8x1xf32>
    %226 = vector.broadcast %225 : vector<8x1xf32> to vector<8x8xf32>
    %227 = arith.subf %223, %226 : vector<8x8xf32>
    %228 = math.exp %227 : vector<8x8xf32>
    %cst_78 = arith.constant dense<0.000000e+00> : vector<8xf32>
    %229 = vector.multi_reduction <add>, %228, %cst_78 [1] : vector<8x8xf32> to vector<8xf32>
    %230 = vector.shape_cast %229 : vector<8xf32> to vector<8x1xf32>
    %231 = tpu.reciprocal %230 {approx = true} : vector<8x1xf32> -> vector<8x1xf32>
    %232 = vector.broadcast %231 : vector<8x1xf32> to vector<8x8xf32>
    %233 = arith.mulf %228, %232 : vector<8x8xf32>
    %234 = arith.truncf %233 : vector<8x8xf32> to vector<8x8xbf16>
    %cst_79 = arith.constant dense<0.000000e+00> : vector<8x8xf32>
    %235 = tpu.matmul %234, %216, %cst_79 {dimension_numbers = #tpu.dot_dimension_numbers<[1], [0], [0], [1], [0, 0, 1, 1], [], []>} : vector<8x8xbf16>, vector<8x8xbf16>, vector<8x8xf32> -> vector<8x8xf32>
    %236 = arith.truncf %235 : vector<8x8xf32> to vector<8x8xbf16>
    %237 = vector.extract_strided_slice %126 {offsets = [24, 0], sizes = [8, 32], strides = [1, 1]} : vector<33x32xbf16> to vector<8x32xbf16>
    %cst_80 = arith.constant dense<0.000000e+00> : vector<8x32xf32>
    %238 = tpu.matmul %236, %237, %cst_80 {dimension_numbers = #tpu.dot_dimension_numbers<[1], [0], [0], [1], [0, 0, 1, 1], [], []>} : vector<8x8xbf16>, vector<8x32xbf16>, vector<8x32xf32> -> vector<8x32xf32>
    %239 = arith.addf %213, %238 : vector<8x32xf32>
    %240 = vector.extract_strided_slice %126 {offsets = [32, 0], sizes = [1, 32], strides = [1, 1]} : vector<33x32xbf16> to vector<1x32xbf16>
    %241 = arith.extf %240 : vector<1x32xbf16> to vector<1x32xf32>
    %242 = vector.broadcast %241 : vector<1x32xf32> to vector<8x32xf32>
    %243 = arith.addf %239, %242 : vector<8x32xf32>
    %cst_81 = arith.constant 0.000000e+00 : f32
    %244 = vector.broadcast %cst_81 : f32 to vector<8x32xf32>
    %245 = arith.maximumf %243, %244 : vector<8x32xf32>
    %c0_82 = arith.constant 0 : index
    %c0_83 = arith.constant 0 : index
    %246 = vector.load %arg9[%c0_82, %c0_83] : memref<33x96xbf16, #tpu.memory_space<vmem>>, vector<33x96xbf16>
    %c0_84 = arith.constant 0 : index
    %c0_85 = arith.constant 0 : index
    %247 = vector.load %arg10[%c0_84, %c0_85] : memref<33x32xbf16, #tpu.memory_space<vmem>>, vector<33x32xbf16>
    %248 = arith.truncf %245 : vector<8x32xf32> to vector<8x32xbf16>
    %249 = vector.extract_strided_slice %246 {offsets = [0, 0], sizes = [32, 96], strides = [1, 1]} : vector<33x96xbf16> to vector<32x96xbf16>
    %cst_86 = arith.constant dense<0.000000e+00> : vector<8x96xf32>
    %250 = tpu.matmul %248, %249, %cst_86 {dimension_numbers = #tpu.dot_dimension_numbers<[1], [0], [0], [1], [0, 0, 1, 1], [], []>} : vector<8x32xbf16>, vector<32x96xbf16>, vector<8x96xf32> -> vector<8x96xf32>
    %251 = vector.extract_strided_slice %246 {offsets = [32, 0], sizes = [1, 96], strides = [1, 1]} : vector<33x96xbf16> to vector<1x96xbf16>
    %252 = arith.extf %251 : vector<1x96xbf16> to vector<1x96xf32>
    %253 = vector.broadcast %252 : vector<1x96xf32> to vector<8x96xf32>
    %254 = arith.addf %250, %253 : vector<8x96xf32>
    %255 = arith.truncf %254 : vector<8x96xf32> to vector<8x96xbf16>
    %cst_87 = arith.constant 0.000000e+00 : f32
    %256 = vector.broadcast %cst_87 : f32 to vector<8x32xf32>
    %257 = vector.extract_strided_slice %255 {offsets = [0, 0], sizes = [8, 8], strides = [1, 1]} : vector<8x96xbf16> to vector<8x8xbf16>
    %258 = vector.extract_strided_slice %255 {offsets = [0, 32], sizes = [8, 8], strides = [1, 1]} : vector<8x96xbf16> to vector<8x8xbf16>
    %259 = vector.extract_strided_slice %255 {offsets = [0, 64], sizes = [8, 8], strides = [1, 1]} : vector<8x96xbf16> to vector<8x8xbf16>
    %cst_88 = arith.constant dense<0.000000e+00> : vector<8x8xf32>
    %260 = tpu.matmul %257, %258, %cst_88 {dimension_numbers = #tpu.dot_dimension_numbers<[1], [1], [0], [0], [0, 0, 1, 0], [], []>} : vector<8x8xbf16>, vector<8x8xbf16>, vector<8x8xf32> -> vector<8x8xf32>
    %cst_89 = arith.constant 0.353553385 : f32
    %261 = vector.broadcast %cst_89 : f32 to vector<8x8xf32>
    %262 = arith.mulf %260, %261 : vector<8x8xf32>
    %cst_90 = arith.constant 0.000000e+00 : f32
    %263 = vector.broadcast %cst_90 : f32 to vector<8x8xf32>
    %264 = arith.cmpf ogt, %3, %263 : vector<8x8xf32>
    %cst_91 = arith.constant -1.000000e+09 : f32
    %265 = vector.broadcast %cst_91 : f32 to vector<8x8xf32>
    %266 = arith.select %264, %262, %265 : vector<8x8xi1>, vector<8x8xf32>
    %cst_92 = arith.constant dense<0xFF800000> : vector<8xf32>
    %267 = vector.multi_reduction <maximumf>, %266, %cst_92 [1] : vector<8x8xf32> to vector<8xf32>
    %268 = vector.shape_cast %267 : vector<8xf32> to vector<8x1xf32>
    %269 = vector.broadcast %268 : vector<8x1xf32> to vector<8x8xf32>
    %270 = arith.subf %266, %269 : vector<8x8xf32>
    %271 = math.exp %270 : vector<8x8xf32>
    %cst_93 = arith.constant dense<0.000000e+00> : vector<8xf32>
    %272 = vector.multi_reduction <add>, %271, %cst_93 [1] : vector<8x8xf32> to vector<8xf32>
    %273 = vector.shape_cast %272 : vector<8xf32> to vector<8x1xf32>
    %274 = tpu.reciprocal %273 {approx = true} : vector<8x1xf32> -> vector<8x1xf32>
    %275 = vector.broadcast %274 : vector<8x1xf32> to vector<8x8xf32>
    %276 = arith.mulf %271, %275 : vector<8x8xf32>
    %277 = arith.truncf %276 : vector<8x8xf32> to vector<8x8xbf16>
    %cst_94 = arith.constant dense<0.000000e+00> : vector<8x8xf32>
    %278 = tpu.matmul %277, %259, %cst_94 {dimension_numbers = #tpu.dot_dimension_numbers<[1], [0], [0], [1], [0, 0, 1, 1], [], []>} : vector<8x8xbf16>, vector<8x8xbf16>, vector<8x8xf32> -> vector<8x8xf32>
    %279 = arith.truncf %278 : vector<8x8xf32> to vector<8x8xbf16>
    %280 = vector.extract_strided_slice %247 {offsets = [0, 0], sizes = [8, 32], strides = [1, 1]} : vector<33x32xbf16> to vector<8x32xbf16>
    %cst_95 = arith.constant dense<0.000000e+00> : vector<8x32xf32>
    %281 = tpu.matmul %279, %280, %cst_95 {dimension_numbers = #tpu.dot_dimension_numbers<[1], [0], [0], [1], [0, 0, 1, 1], [], []>} : vector<8x8xbf16>, vector<8x32xbf16>, vector<8x32xf32> -> vector<8x32xf32>
    %282 = arith.addf %256, %281 : vector<8x32xf32>
    %283 = vector.extract_strided_slice %255 {offsets = [0, 8], sizes = [8, 8], strides = [1, 1]} : vector<8x96xbf16> to vector<8x8xbf16>
    %284 = vector.extract_strided_slice %255 {offsets = [0, 40], sizes = [8, 8], strides = [1, 1]} : vector<8x96xbf16> to vector<8x8xbf16>
    %285 = vector.extract_strided_slice %255 {offsets = [0, 72], sizes = [8, 8], strides = [1, 1]} : vector<8x96xbf16> to vector<8x8xbf16>
    %cst_96 = arith.constant dense<0.000000e+00> : vector<8x8xf32>
    %286 = tpu.matmul %283, %284, %cst_96 {dimension_numbers = #tpu.dot_dimension_numbers<[1], [1], [0], [0], [0, 0, 1, 0], [], []>} : vector<8x8xbf16>, vector<8x8xbf16>, vector<8x8xf32> -> vector<8x8xf32>
    %cst_97 = arith.constant 0.353553385 : f32
    %287 = vector.broadcast %cst_97 : f32 to vector<8x8xf32>
    %288 = arith.mulf %286, %287 : vector<8x8xf32>
    %cst_98 = arith.constant 0.000000e+00 : f32
    %289 = vector.broadcast %cst_98 : f32 to vector<8x8xf32>
    %290 = arith.cmpf ogt, %3, %289 : vector<8x8xf32>
    %cst_99 = arith.constant -1.000000e+09 : f32
    %291 = vector.broadcast %cst_99 : f32 to vector<8x8xf32>
    %292 = arith.select %290, %288, %291 : vector<8x8xi1>, vector<8x8xf32>
    %cst_100 = arith.constant dense<0xFF800000> : vector<8xf32>
    %293 = vector.multi_reduction <maximumf>, %292, %cst_100 [1] : vector<8x8xf32> to vector<8xf32>
    %294 = vector.shape_cast %293 : vector<8xf32> to vector<8x1xf32>
    %295 = vector.broadcast %294 : vector<8x1xf32> to vector<8x8xf32>
    %296 = arith.subf %292, %295 : vector<8x8xf32>
    %297 = math.exp %296 : vector<8x8xf32>
    %cst_101 = arith.constant dense<0.000000e+00> : vector<8xf32>
    %298 = vector.multi_reduction <add>, %297, %cst_101 [1] : vector<8x8xf32> to vector<8xf32>
    %299 = vector.shape_cast %298 : vector<8xf32> to vector<8x1xf32>
    %300 = tpu.reciprocal %299 {approx = true} : vector<8x1xf32> -> vector<8x1xf32>
    %301 = vector.broadcast %300 : vector<8x1xf32> to vector<8x8xf32>
    %302 = arith.mulf %297, %301 : vector<8x8xf32>
    %303 = arith.truncf %302 : vector<8x8xf32> to vector<8x8xbf16>
    %cst_102 = arith.constant dense<0.000000e+00> : vector<8x8xf32>
    %304 = tpu.matmul %303, %285, %cst_102 {dimension_numbers = #tpu.dot_dimension_numbers<[1], [0], [0], [1], [0, 0, 1, 1], [], []>} : vector<8x8xbf16>, vector<8x8xbf16>, vector<8x8xf32> -> vector<8x8xf32>
    %305 = arith.truncf %304 : vector<8x8xf32> to vector<8x8xbf16>
    %306 = vector.extract_strided_slice %247 {offsets = [8, 0], sizes = [8, 32], strides = [1, 1]} : vector<33x32xbf16> to vector<8x32xbf16>
    %cst_103 = arith.constant dense<0.000000e+00> : vector<8x32xf32>
    %307 = tpu.matmul %305, %306, %cst_103 {dimension_numbers = #tpu.dot_dimension_numbers<[1], [0], [0], [1], [0, 0, 1, 1], [], []>} : vector<8x8xbf16>, vector<8x32xbf16>, vector<8x32xf32> -> vector<8x32xf32>
    %308 = arith.addf %282, %307 : vector<8x32xf32>
    %309 = vector.extract_strided_slice %255 {offsets = [0, 16], sizes = [8, 8], strides = [1, 1]} : vector<8x96xbf16> to vector<8x8xbf16>
    %310 = vector.extract_strided_slice %255 {offsets = [0, 48], sizes = [8, 8], strides = [1, 1]} : vector<8x96xbf16> to vector<8x8xbf16>
    %311 = vector.extract_strided_slice %255 {offsets = [0, 80], sizes = [8, 8], strides = [1, 1]} : vector<8x96xbf16> to vector<8x8xbf16>
    %cst_104 = arith.constant dense<0.000000e+00> : vector<8x8xf32>
    %312 = tpu.matmul %309, %310, %cst_104 {dimension_numbers = #tpu.dot_dimension_numbers<[1], [1], [0], [0], [0, 0, 1, 0], [], []>} : vector<8x8xbf16>, vector<8x8xbf16>, vector<8x8xf32> -> vector<8x8xf32>
    %cst_105 = arith.constant 0.353553385 : f32
    %313 = vector.broadcast %cst_105 : f32 to vector<8x8xf32>
    %314 = arith.mulf %312, %313 : vector<8x8xf32>
    %cst_106 = arith.constant 0.000000e+00 : f32
    %315 = vector.broadcast %cst_106 : f32 to vector<8x8xf32>
    %316 = arith.cmpf ogt, %3, %315 : vector<8x8xf32>
    %cst_107 = arith.constant -1.000000e+09 : f32
    %317 = vector.broadcast %cst_107 : f32 to vector<8x8xf32>
    %318 = arith.select %316, %314, %317 : vector<8x8xi1>, vector<8x8xf32>
    %cst_108 = arith.constant dense<0xFF800000> : vector<8xf32>
    %319 = vector.multi_reduction <maximumf>, %318, %cst_108 [1] : vector<8x8xf32> to vector<8xf32>
    %320 = vector.shape_cast %319 : vector<8xf32> to vector<8x1xf32>
    %321 = vector.broadcast %320 : vector<8x1xf32> to vector<8x8xf32>
    %322 = arith.subf %318, %321 : vector<8x8xf32>
    %323 = math.exp %322 : vector<8x8xf32>
    %cst_109 = arith.constant dense<0.000000e+00> : vector<8xf32>
    %324 = vector.multi_reduction <add>, %323, %cst_109 [1] : vector<8x8xf32> to vector<8xf32>
    %325 = vector.shape_cast %324 : vector<8xf32> to vector<8x1xf32>
    %326 = tpu.reciprocal %325 {approx = true} : vector<8x1xf32> -> vector<8x1xf32>
    %327 = vector.broadcast %326 : vector<8x1xf32> to vector<8x8xf32>
    %328 = arith.mulf %323, %327 : vector<8x8xf32>
    %329 = arith.truncf %328 : vector<8x8xf32> to vector<8x8xbf16>
    %cst_110 = arith.constant dense<0.000000e+00> : vector<8x8xf32>
    %330 = tpu.matmul %329, %311, %cst_110 {dimension_numbers = #tpu.dot_dimension_numbers<[1], [0], [0], [1], [0, 0, 1, 1], [], []>} : vector<8x8xbf16>, vector<8x8xbf16>, vector<8x8xf32> -> vector<8x8xf32>
    %331 = arith.truncf %330 : vector<8x8xf32> to vector<8x8xbf16>
    %332 = vector.extract_strided_slice %247 {offsets = [16, 0], sizes = [8, 32], strides = [1, 1]} : vector<33x32xbf16> to vector<8x32xbf16>
    %cst_111 = arith.constant dense<0.000000e+00> : vector<8x32xf32>
    %333 = tpu.matmul %331, %332, %cst_111 {dimension_numbers = #tpu.dot_dimension_numbers<[1], [0], [0], [1], [0, 0, 1, 1], [], []>} : vector<8x8xbf16>, vector<8x32xbf16>, vector<8x32xf32> -> vector<8x32xf32>
    %334 = arith.addf %308, %333 : vector<8x32xf32>
    %335 = vector.extract_strided_slice %255 {offsets = [0, 24], sizes = [8, 8], strides = [1, 1]} : vector<8x96xbf16> to vector<8x8xbf16>
    %336 = vector.extract_strided_slice %255 {offsets = [0, 56], sizes = [8, 8], strides = [1, 1]} : vector<8x96xbf16> to vector<8x8xbf16>
    %337 = vector.extract_strided_slice %255 {offsets = [0, 88], sizes = [8, 8], strides = [1, 1]} : vector<8x96xbf16> to vector<8x8xbf16>
    %cst_112 = arith.constant dense<0.000000e+00> : vector<8x8xf32>
    %338 = tpu.matmul %335, %336, %cst_112 {dimension_numbers = #tpu.dot_dimension_numbers<[1], [1], [0], [0], [0, 0, 1, 0], [], []>} : vector<8x8xbf16>, vector<8x8xbf16>, vector<8x8xf32> -> vector<8x8xf32>
    %cst_113 = arith.constant 0.353553385 : f32
    %339 = vector.broadcast %cst_113 : f32 to vector<8x8xf32>
    %340 = arith.mulf %338, %339 : vector<8x8xf32>
    %cst_114 = arith.constant 0.000000e+00 : f32
    %341 = vector.broadcast %cst_114 : f32 to vector<8x8xf32>
    %342 = arith.cmpf ogt, %3, %341 : vector<8x8xf32>
    %cst_115 = arith.constant -1.000000e+09 : f32
    %343 = vector.broadcast %cst_115 : f32 to vector<8x8xf32>
    %344 = arith.select %342, %340, %343 : vector<8x8xi1>, vector<8x8xf32>
    %cst_116 = arith.constant dense<0xFF800000> : vector<8xf32>
    %345 = vector.multi_reduction <maximumf>, %344, %cst_116 [1] : vector<8x8xf32> to vector<8xf32>
    %346 = vector.shape_cast %345 : vector<8xf32> to vector<8x1xf32>
    %347 = vector.broadcast %346 : vector<8x1xf32> to vector<8x8xf32>
    %348 = arith.subf %344, %347 : vector<8x8xf32>
    %349 = math.exp %348 : vector<8x8xf32>
    %cst_117 = arith.constant dense<0.000000e+00> : vector<8xf32>
    %350 = vector.multi_reduction <add>, %349, %cst_117 [1] : vector<8x8xf32> to vector<8xf32>
    %351 = vector.shape_cast %350 : vector<8xf32> to vector<8x1xf32>
    %352 = tpu.reciprocal %351 {approx = true} : vector<8x1xf32> -> vector<8x1xf32>
    %353 = vector.broadcast %352 : vector<8x1xf32> to vector<8x8xf32>
    %354 = arith.mulf %349, %353 : vector<8x8xf32>
    %355 = arith.truncf %354 : vector<8x8xf32> to vector<8x8xbf16>
    %cst_118 = arith.constant dense<0.000000e+00> : vector<8x8xf32>
    %356 = tpu.matmul %355, %337, %cst_118 {dimension_numbers = #tpu.dot_dimension_numbers<[1], [0], [0], [1], [0, 0, 1, 1], [], []>} : vector<8x8xbf16>, vector<8x8xbf16>, vector<8x8xf32> -> vector<8x8xf32>
    %357 = arith.truncf %356 : vector<8x8xf32> to vector<8x8xbf16>
    %358 = vector.extract_strided_slice %247 {offsets = [24, 0], sizes = [8, 32], strides = [1, 1]} : vector<33x32xbf16> to vector<8x32xbf16>
    %cst_119 = arith.constant dense<0.000000e+00> : vector<8x32xf32>
    %359 = tpu.matmul %357, %358, %cst_119 {dimension_numbers = #tpu.dot_dimension_numbers<[1], [0], [0], [1], [0, 0, 1, 1], [], []>} : vector<8x8xbf16>, vector<8x32xbf16>, vector<8x32xf32> -> vector<8x32xf32>
    %360 = arith.addf %334, %359 : vector<8x32xf32>
    %361 = vector.extract_strided_slice %247 {offsets = [32, 0], sizes = [1, 32], strides = [1, 1]} : vector<33x32xbf16> to vector<1x32xbf16>
    %362 = arith.extf %361 : vector<1x32xbf16> to vector<1x32xf32>
    %363 = vector.broadcast %362 : vector<1x32xf32> to vector<8x32xf32>
    %364 = arith.addf %360, %363 : vector<8x32xf32>
    %cst_120 = arith.constant 0.000000e+00 : f32
    %365 = vector.broadcast %cst_120 : f32 to vector<8x32xf32>
    %366 = arith.maximumf %364, %365 : vector<8x32xf32>
    %367 = arith.truncf %366 : vector<8x32xf32> to vector<8x32xbf16>
    %c0_121 = arith.constant 0 : index
    %c0_122 = arith.constant 0 : index
    %368 = vector.load %arg11[%c0_121, %c0_122] : memref<33x6xbf16, #tpu.memory_space<vmem>>, vector<33x6xbf16>
    %369 = vector.extract_strided_slice %368 {offsets = [0, 0], sizes = [32, 6], strides = [1, 1]} : vector<33x6xbf16> to vector<32x6xbf16>
    %cst_123 = arith.constant dense<0.000000e+00> : vector<8x6xf32>
    %370 = tpu.matmul %367, %369, %cst_123 {dimension_numbers = #tpu.dot_dimension_numbers<[1], [0], [0], [1], [0, 0, 1, 1], [], []>} : vector<8x32xbf16>, vector<32x6xbf16>, vector<8x6xf32> -> vector<8x6xf32>
    %371 = vector.extract_strided_slice %368 {offsets = [32, 0], sizes = [1, 6], strides = [1, 1]} : vector<33x6xbf16> to vector<1x6xbf16>
    %372 = arith.extf %371 : vector<1x6xbf16> to vector<1x6xf32>
    %373 = vector.broadcast %372 : vector<1x6xf32> to vector<8x6xf32>
    %374 = arith.addf %370, %373 : vector<8x6xf32>
    %cst_124 = arith.constant dense<0xFF800000> : vector<8xf32>
    %375 = vector.multi_reduction <maximumf>, %374, %cst_124 [1] : vector<8x6xf32> to vector<8xf32>
    %376 = vector.shape_cast %375 : vector<8xf32> to vector<8x1xf32>
    %377 = vector.broadcast %376 : vector<8x1xf32> to vector<8x6xf32>
    %378 = arith.subf %374, %377 : vector<8x6xf32>
    %379 = math.exp %378 : vector<8x6xf32>
    %cst_125 = arith.constant dense<0.000000e+00> : vector<8xf32>
    %380 = vector.multi_reduction <add>, %379, %cst_125 [1] : vector<8x6xf32> to vector<8xf32>
    %381 = vector.shape_cast %380 : vector<8xf32> to vector<8x1xf32>
    %382 = vector.broadcast %381 : vector<8x1xf32> to vector<8x6xf32>
    %383 = arith.divf %379, %382 : vector<8x6xf32>
    %c0_126 = arith.constant 0 : index
    %c0_127 = arith.constant 0 : index
    %c0_128 = arith.constant 0 : index
    %384 = vector.load %arg3[%c0_126, %c0_127, %c0_128] : memref<1x8x6xf32, #tpu.memory_space<vmem>>, vector<1x8x6xf32>
    %385 = vector.shape_cast %384 : vector<1x8x6xf32> to vector<8x6xf32>
    %386 = arith.addf %374, %385 : vector<8x6xf32>
    %cst_129 = arith.constant 1.000000e+00 : f32
    %387 = vector.broadcast %cst_129 : f32 to vector<8x6xf32>
    %388 = arith.mulf %386, %387 : vector<8x6xf32>
    %cst_130 = arith.constant dense<0xFF800000> : vector<8xf32>
    %389 = vector.multi_reduction <maximumf>, %388, %cst_130 [1] : vector<8x6xf32> to vector<8xf32>
    %390 = vector.shape_cast %389 : vector<8xf32> to vector<8x1xf32>
    %391 = vector.broadcast %390 : vector<8x1xf32> to vector<8x6xf32>
    %392 = arith.subf %388, %391 : vector<8x6xf32>
    %393 = math.exp %392 : vector<8x6xf32>
    %cst_131 = arith.constant dense<0.000000e+00> : vector<8xf32>
    %394 = vector.multi_reduction <add>, %393, %cst_131 [1] : vector<8x6xf32> to vector<8xf32>
    %395 = vector.shape_cast %394 : vector<8xf32> to vector<8x1xf32>
    %396 = vector.broadcast %395 : vector<8x1xf32> to vector<8x6xf32>
    %397 = arith.divf %393, %396 : vector<8x6xf32>
    %398 = arith.truncf %397 : vector<8x6xf32> to vector<8x6xbf16>
    %c0_132 = arith.constant 0 : index
    %c0_133 = arith.constant 0 : index
    %399 = vector.load %arg12[%c0_132, %c0_133] : memref<33x64xbf16, #tpu.memory_space<vmem>>, vector<33x64xbf16>
    %c0_134 = arith.constant 0 : index
    %c0_135 = arith.constant 0 : index
    %400 = vector.load %arg13[%c0_134, %c0_135] : memref<6x64xbf16, #tpu.memory_space<vmem>>, vector<6x64xbf16>
    %401 = vector.extract_strided_slice %399 {offsets = [0, 0], sizes = [32, 64], strides = [1, 1]} : vector<33x64xbf16> to vector<32x64xbf16>
    %cst_136 = arith.constant dense<0.000000e+00> : vector<8x64xf32>
    %402 = tpu.matmul %367, %401, %cst_136 {dimension_numbers = #tpu.dot_dimension_numbers<[1], [0], [0], [1], [0, 0, 1, 1], [], []>} : vector<8x32xbf16>, vector<32x64xbf16>, vector<8x64xf32> -> vector<8x64xf32>
    %cst_137 = arith.constant dense<0.000000e+00> : vector<8x64xf32>
    %403 = tpu.matmul %398, %400, %cst_137 {dimension_numbers = #tpu.dot_dimension_numbers<[1], [0], [0], [1], [0, 0, 1, 1], [], []>} : vector<8x6xbf16>, vector<6x64xbf16>, vector<8x64xf32> -> vector<8x64xf32>
    %404 = arith.addf %402, %403 : vector<8x64xf32>
    %405 = vector.extract_strided_slice %399 {offsets = [32, 0], sizes = [1, 64], strides = [1, 1]} : vector<33x64xbf16> to vector<1x64xbf16>
    %406 = arith.extf %405 : vector<1x64xbf16> to vector<1x64xf32>
    %407 = vector.broadcast %406 : vector<1x64xf32> to vector<8x64xf32>
    %408 = arith.addf %404, %407 : vector<8x64xf32>
    %409 = tpu.iota {dimensions = array<i32: 1>} : vector<8x64xi32>
    %c32_i32 = arith.constant 32 : i32
    %410 = vector.broadcast %c32_i32 : i32 to vector<8x64xi32>
    %411 = arith.cmpi sge, %409, %410 : vector<8x64xi32>
    %cst_138 = arith.constant 0.000000e+00 : f32
    %412 = vector.broadcast %cst_138 : f32 to vector<8x64xf32>
    %413 = arith.maximumf %408, %412 : vector<8x64xf32>
    %414 = vector.broadcast %cst_138 : f32 to vector<8x64xf32>
    %415 = arith.subf %408, %414 : vector<8x64xf32>
    %416 = arith.cmpf one, %415, %415 : vector<8x64xf32>
    %417 = vector.broadcast %cst_138 : f32 to vector<8x64xf32>
    %418 = arith.addf %408, %417 : vector<8x64xf32>
    %419 = math.absf %415 : vector<8x64xf32>
    %cst_139 = arith.constant 0.000000e+00 : f32
    %420 = vector.broadcast %cst_139 : f32 to vector<8x64xf32>
    %421 = arith.subf %420, %419 : vector<8x64xf32>
    %422 = math.exp %421 : vector<8x64xf32>
    %423 = math.log1p %422 : vector<8x64xf32>
    %424 = arith.addf %413, %423 : vector<8x64xf32>
    %425 = arith.select %416, %418, %424 : vector<8x64xi1>, vector<8x64xf32>
    %426 = arith.select %411, %425, %408 : vector<8x64xi1>, vector<8x64xf32>
    %427 = vector.extract_strided_slice %426 {offsets = [0, 0], sizes = [8, 32], strides = [1, 1]} : vector<8x64xf32> to vector<8x32xf32>
    %428 = vector.extract_strided_slice %426 {offsets = [0, 32], sizes = [8, 32], strides = [1, 1]} : vector<8x64xf32> to vector<8x32xf32>
    %429 = math.sqrt %428 : vector<8x32xf32>
    %c0_140 = arith.constant 0 : index
    %c0_141 = arith.constant 0 : index
    %c0_142 = arith.constant 0 : index
    %430 = vector.load %arg4[%c0_140, %c0_141, %c0_142] : memref<1x8x32xf32, #tpu.memory_space<vmem>>, vector<1x8x32xf32>
    %431 = vector.shape_cast %430 : vector<1x8x32xf32> to vector<8x32xf32>
    %432 = arith.mulf %429, %431 : vector<8x32xf32>
    %433 = arith.addf %427, %432 : vector<8x32xf32>
    %c0_143 = arith.constant 0 : index
    %c0_144 = arith.constant 0 : index
    %434 = vector.load %arg14[%c0_143, %c0_144] : memref<7x64xbf16, #tpu.memory_space<vmem>>, vector<7x64xbf16>
    %435 = vector.extract_strided_slice %434 {offsets = [0, 0], sizes = [6, 64], strides = [1, 1]} : vector<7x64xbf16> to vector<6x64xbf16>
    %cst_145 = arith.constant dense<0.000000e+00> : vector<8x64xf32>
    %436 = tpu.matmul %398, %435, %cst_145 {dimension_numbers = #tpu.dot_dimension_numbers<[1], [0], [0], [1], [0, 0, 1, 1], [], []>} : vector<8x6xbf16>, vector<6x64xbf16>, vector<8x64xf32> -> vector<8x64xf32>
    %437 = vector.extract_strided_slice %434 {offsets = [6, 0], sizes = [1, 64], strides = [1, 1]} : vector<7x64xbf16> to vector<1x64xbf16>
    %438 = arith.extf %437 : vector<1x64xbf16> to vector<1x64xf32>
    %439 = vector.broadcast %438 : vector<1x64xf32> to vector<8x64xf32>
    %440 = arith.addf %436, %439 : vector<8x64xf32>
    %441 = tpu.iota {dimensions = array<i32: 1>} : vector<8x64xi32>
    %c32_i32_146 = arith.constant 32 : i32
    %442 = vector.broadcast %c32_i32_146 : i32 to vector<8x64xi32>
    %443 = arith.cmpi sge, %441, %442 : vector<8x64xi32>
    %cst_147 = arith.constant 0.000000e+00 : f32
    %444 = vector.broadcast %cst_147 : f32 to vector<8x64xf32>
    %445 = arith.maximumf %440, %444 : vector<8x64xf32>
    %446 = vector.broadcast %cst_147 : f32 to vector<8x64xf32>
    %447 = arith.subf %440, %446 : vector<8x64xf32>
    %448 = arith.cmpf one, %447, %447 : vector<8x64xf32>
    %449 = vector.broadcast %cst_147 : f32 to vector<8x64xf32>
    %450 = arith.addf %440, %449 : vector<8x64xf32>
    %451 = math.absf %447 : vector<8x64xf32>
    %cst_148 = arith.constant 0.000000e+00 : f32
    %452 = vector.broadcast %cst_148 : f32 to vector<8x64xf32>
    %453 = arith.subf %452, %451 : vector<8x64xf32>
    %454 = math.exp %453 : vector<8x64xf32>
    %455 = math.log1p %454 : vector<8x64xf32>
    %456 = arith.addf %445, %455 : vector<8x64xf32>
    %457 = arith.select %448, %450, %456 : vector<8x64xi1>, vector<8x64xf32>
    %458 = arith.select %443, %457, %440 : vector<8x64xi1>, vector<8x64xf32>
    %459 = arith.truncf %433 : vector<8x32xf32> to vector<8x32xbf16>
    %cst_149 = arith.constant dense<0.000000e+00> : vector<8x8xf32>
    %460 = tpu.matmul %459, %459, %cst_149 {dimension_numbers = #tpu.dot_dimension_numbers<[1], [1], [0], [0], [0, 0, 1, 0], [], []>} : vector<8x32xbf16>, vector<8x32xbf16>, vector<8x8xf32> -> vector<8x8xf32>
    %461 = arith.negf %460 : vector<8x8xf32>
    %462 = math.exp %461 : vector<8x8xf32>
    %cst_150 = arith.constant 1.000000e+00 : f32
    %463 = vector.broadcast %cst_150 : f32 to vector<8x8xf32>
    %464 = arith.addf %463, %462 : vector<8x8xf32>
    %465 = arith.divf %463, %464 : vector<8x8xf32>
    %466 = tpu.concatenate %426, %433 in 1 : vector<8x64xf32>, vector<8x32xf32> -> vector<8x96xf32>
    %c0_151 = arith.constant 0 : index
    %c0_152 = arith.constant 0 : index
    %c0_153 = arith.constant 0 : index
    %467 = vector.load %arg15[%c0_151, %c0_152, %c0_153] : memref<1x8x96xf32, #tpu.memory_space<vmem>>, vector<1x8x96xf32>
    %468 = vector.shape_cast %467 : vector<1x8x96xf32> to vector<8x96xf32>
    %469 = vector.shape_cast %466 : vector<8x96xf32> to vector<1x8x96xf32>
    tpu.vector_store %arg15[%c0_151, %c0_152, %c0_153], %469 {strides = array<i32>} : memref<1x8x96xf32, #tpu.memory_space<vmem>>, vector<1x8x96xf32>,
    %c0_154 = arith.constant 0 : index
    %c0_155 = arith.constant 0 : index
    %c0_156 = arith.constant 0 : index
    %470 = vector.load %arg16[%c0_154, %c0_155, %c0_156] : memref<1x8x64xf32, #tpu.memory_space<vmem>>, vector<1x8x64xf32>
    %471 = vector.shape_cast %470 : vector<1x8x64xf32> to vector<8x64xf32>
    %472 = vector.shape_cast %458 : vector<8x64xf32> to vector<1x8x64xf32>
    tpu.vector_store %arg16[%c0_154, %c0_155, %c0_156], %472 {strides = array<i32>} : memref<1x8x64xf32, #tpu.memory_space<vmem>>, vector<1x8x64xf32>,
    %473 = tpu.concatenate %374, %383, %397 in 1 : vector<8x6xf32>, vector<8x6xf32>, vector<8x6xf32> -> vector<8x18xf32>
    %c0_157 = arith.constant 0 : index
    %c0_158 = arith.constant 0 : index
    %c0_159 = arith.constant 0 : index
    %474 = vector.load %arg17[%c0_157, %c0_158, %c0_159] : memref<1x8x18xf32, #tpu.memory_space<vmem>>, vector<1x8x18xf32>
    %475 = vector.shape_cast %474 : vector<1x8x18xf32> to vector<8x18xf32>
    %476 = vector.shape_cast %473 : vector<8x18xf32> to vector<1x8x18xf32>
    tpu.vector_store %arg17[%c0_157, %c0_158, %c0_159], %476 {strides = array<i32>} : memref<1x8x18xf32, #tpu.memory_space<vmem>>, vector<1x8x18xf32>,
    %c0_160 = arith.constant 0 : index
    %c0_161 = arith.constant 0 : index
    %c0_162 = arith.constant 0 : index
    %477 = vector.load %arg18[%c0_160, %c0_161, %c0_162] : memref<1x8x8xf32, #tpu.memory_space<vmem>>, vector<1x8x8xf32>
    %478 = vector.shape_cast %477 : vector<1x8x8xf32> to vector<8x8xf32>
    %479 = vector.shape_cast %465 : vector<8x8xf32> to vector<1x8x8xf32>
    tpu.vector_store %arg18[%c0_160, %c0_161, %c0_162], %479 {strides = array<i32>} : memref<1x8x8xf32, #tpu.memory_space<vmem>>, vector<1x8x8xf32>,
    return
  }
  func.func @transform_0(%arg0: i32) -> (i32, i32, i32) {
    %c0_i32 = arith.constant 0 : i32
    %c0_i32_0 = arith.constant 0 : i32
    %c0_i32_1 = arith.constant 0 : i32
    return %arg0, %c0_i32, %c0_i32_0 : i32, i32, i32
  }
  func.func @transform_1(%arg0: i32) -> (i32, i32, i32) {
    %c0_i32 = arith.constant 0 : i32
    %c0_i32_0 = arith.constant 0 : i32
    %c0_i32_1 = arith.constant 0 : i32
    return %arg0, %c0_i32, %c0_i32_0 : i32, i32, i32
  }
  func.func @transform_2(%arg0: i32) -> (i32, i32, i32) {
    %c0_i32 = arith.constant 0 : i32
    %c0_i32_0 = arith.constant 0 : i32
    %c0_i32_1 = arith.constant 0 : i32
    return %arg0, %c0_i32, %c0_i32_0 : i32, i32, i32
  }
  func.func @transform_3(%arg0: i32) -> (i32, i32, i32) {
    %c0_i32 = arith.constant 0 : i32
    %c0_i32_0 = arith.constant 0 : i32
    %c0_i32_1 = arith.constant 0 : i32
    return %arg0, %c0_i32, %c0_i32_0 : i32, i32, i32
  }
  func.func @transform_4(%arg0: i32) -> (i32, i32) {
    %c0_i32 = arith.constant 0 : i32
    %c0_i32_0 = arith.constant 0 : i32
    %c0_i32_1 = arith.constant 0 : i32
    return %c0_i32, %c0_i32_0 : i32, i32
  }
  func.func @transform_5(%arg0: i32) -> (i32, i32) {
    %c0_i32 = arith.constant 0 : i32
    %c0_i32_0 = arith.constant 0 : i32
    %c0_i32_1 = arith.constant 0 : i32
    return %c0_i32, %c0_i32_0 : i32, i32
  }
  func.func @transform_6(%arg0: i32) -> (i32, i32) {
    %c0_i32 = arith.constant 0 : i32
    %c0_i32_0 = arith.constant 0 : i32
    %c0_i32_1 = arith.constant 0 : i32
    return %c0_i32, %c0_i32_0 : i32, i32
  }
  func.func @transform_7(%arg0: i32) -> (i32, i32) {
    %c0_i32 = arith.constant 0 : i32
    %c0_i32_0 = arith.constant 0 : i32
    %c0_i32_1 = arith.constant 0 : i32
    return %c0_i32, %c0_i32_0 : i32, i32
  }
  func.func @transform_8(%arg0: i32) -> (i32, i32) {
    %c0_i32 = arith.constant 0 : i32
    %c0_i32_0 = arith.constant 0 : i32
    %c0_i32_1 = arith.constant 0 : i32
    return %c0_i32, %c0_i32_0 : i32, i32
  }
  func.func @transform_9(%arg0: i32) -> (i32, i32) {
    %c0_i32 = arith.constant 0 : i32
    %c0_i32_0 = arith.constant 0 : i32
    %c0_i32_1 = arith.constant 0 : i32
    return %c0_i32, %c0_i32_0 : i32, i32
  }
  func.func @transform_10(%arg0: i32) -> (i32, i32) {
    %c0_i32 = arith.constant 0 : i32
    %c0_i32_0 = arith.constant 0 : i32
    %c0_i32_1 = arith.constant 0 : i32
    return %c0_i32, %c0_i32_0 : i32, i32
  }
  func.func @transform_11(%arg0: i32) -> (i32, i32) {
    %c0_i32 = arith.constant 0 : i32
    %c0_i32_0 = arith.constant 0 : i32
    %c0_i32_1 = arith.constant 0 : i32
    return %c0_i32, %c0_i32_0 : i32, i32
  }
  func.func @transform_12(%arg0: i32) -> (i32, i32) {
    %c0_i32 = arith.constant 0 : i32
    %c0_i32_0 = arith.constant 0 : i32
    %c0_i32_1 = arith.constant 0 : i32
    return %c0_i32, %c0_i32_0 : i32, i32
  }
  func.func @transform_13(%arg0: i32) -> (i32, i32) {
    %c0_i32 = arith.constant 0 : i32
    %c0_i32_0 = arith.constant 0 : i32
    %c0_i32_1 = arith.constant 0 : i32
    return %c0_i32, %c0_i32_0 : i32, i32
  }
  func.func @transform_14(%arg0: i32) -> (i32, i32, i32) {
    %c0_i32 = arith.constant 0 : i32
    %c0_i32_0 = arith.constant 0 : i32
    %c0_i32_1 = arith.constant 0 : i32
    return %arg0, %c0_i32, %c0_i32_0 : i32, i32, i32
  }
  func.func @transform_15(%arg0: i32) -> (i32, i32, i32) {
    %c0_i32 = arith.constant 0 : i32
    %c0_i32_0 = arith.constant 0 : i32
    %c0_i32_1 = arith.constant 0 : i32
    return %arg0, %c0_i32, %c0_i32_0 : i32, i32, i32
  }
  func.func @transform_16(%arg0: i32) -> (i32, i32, i32) {
    %c0_i32 = arith.constant 0 : i32
    %c0_i32_0 = arith.constant 0 : i32
    %c0_i32_1 = arith.constant 0 : i32
    return %arg0, %c0_i32, %c0_i32_0 : i32, i32, i32
  }
  func.func @transform_17(%arg0: i32) -> (i32, i32, i32) {
    %c0_i32 = arith.constant 0 : i32
    %c0_i32_0 = arith.constant 0 : i32
    %c0_i32_1 = arith.constant 0 : i32
    return %arg0, %c0_i32, %c0_i32_0 : i32, i32, i32
  }
}

</mosaic_0001>

<bundles_post_ra>
// kernel: vae_forward.3
= control target key start
LH: loop header
LB: loop body
LE: loop exit
PB: predicated region body
PF: predicated region fallthrough
CT: control target
= control target key end

     0   :  { %s3405_s0 = inlined_call_operand.hbm [shape: f32[2,8,16], index: 0, kind: input, shape index: {}]   ;;  %s3406_s1 = inlined_call_operand.hbm [shape: f32[2,8,8], index: 1, kind: input, shape index: {}]   ;;  %s3407_s2 = inlined_call_operand.vmem [shape: f32[2,8,6], index: 2, kind: input, shape index: {}]   ;;  %s3408_s3 = inlined_call_operand.vmem [shape: f32[2,8,32], index: 3, kind: input, shape index: {}]   ;;  %s3409_s4 = inlined_call_operand.vmem [shape: bf16[17,96], index: 4, kind: input, shape index: {}]   ;;  %s3410_s5 = inlined_call_operand.hbm [shape: bf16[33,32], index: 5, kind: input, shape index: {}]   ;;  %s3411_s6 = inlined_call_operand.hbm [shape: bf16[33,96], index: 6, kind: input, shape index: {}]   ;;  %s3412_s7 = inlined_call_operand.vmem [shape: bf16[33,32], index: 7, kind: input, shape index: {}]   ;;  %s3413_s8 = inlined_call_operand.vmem [shape: bf16[33,96], index: 8, kind: input, shape index: {}]   ;;  %s3414_s9 = inlined_call_operand.vmem [shape: bf16[33,32], index: 9, kind: input, shape index: {}]   ;;  %s3415_s10 = inlined_call_operand.vmem [shape: bf16[33,6], index: 10, kind: input, shape index: {}]   ;;  %s3416_s11 = inlined_call_operand.vmem [shape: bf16[33,64], index: 11, kind: input, shape index: {}]   ;;  %s3417_s12 = inlined_call_operand.vmem [shape: bf16[6,64], index: 12, kind: input, shape index: {}]   ;;  %s3418_s13 = inlined_call_operand.vmem [shape: bf16[7,64], index: 13, kind: input, shape index: {}]   ;;  %s3419_s14 = inlined_call_operand.vmem [shape: f32[2,8,96], index: 14, kind: output, shape index: {0}]   ;;  %s3420_s15 = inlined_call_operand.vmem [shape: f32[2,8,64], index: 15, kind: output, shape index: {1}]   ;;  %s3421_s16 = inlined_call_operand.vmem [shape: f32[2,8,18], index: 16, kind: output, shape index: {2}]   ;;  %s3422_s17 = inlined_call_operand.hbm [shape: f32[2,8,8], index: 17, kind: output, shape index: {3}]  }
   0x1   :  { %3434 = sst [smem:[#allocation23_spill]] %s3405_s0 }
   0x2   :  { %3435 = sst [smem:[#allocation24_spill]] %s3406_s1 }
   0x3   :  { %3436 = sst [smem:[#allocation25_spill]] %s3407_s2 }
   0x4   :  { %3437 = sst [smem:[#allocation26_spill]] %s3410_s5 }
   0x5   :  { %3438 = sst [smem:[#allocation27_spill]] %s3411_s6 }
   0x6   :  { %3439 = sst [smem:[#allocation28_spill]] %s3417_s12 }
   0x7   :  { %3440 = sst [smem:[#allocation29_spill]] %s3418_s13 }
   0x8   :  { %3441 = sst [smem:[#allocation30_spill]] %s3419_s14 }
   0x9   :  { %3442 = sst [smem:[#allocation31_spill]] %s3420_s15 }
   0xa   :  { %3443 = sst [smem:[#allocation32_spill]] %s3421_s16 }
   0xb   :  { %3444 = sst [smem:[#allocation33_spill]] %s3422_s17 }
   0xc   :  { %23 = vsyncpa [#allocation3], 0 }
   0xd   :  { %25 = vsyncpa [#allocation3 + $0x1], 0 }
   0xe   :  { %26 = vsyncpa [#allocation6], 0 }
   0xf   :  { %28 = vsyncpa [#allocation6 + $0x1], 0 }
  0x10   :  { %29 = vsyncpa [#allocation9], 0 }
  0x11   :  { %30 = vsyncpa [#allocation4], 0 }
  0x12   :  { %32 = vsyncpa [#allocation4 + $0x1], 0  ;;  %s2895_s24 = smov 0   ;;  %s2897_s25 = smov 0  }
  0x13   :  { %s2899_s26 = smov 0   ;;  %s2901_s27 = smov 0  }
  0x14 LB: > { %3445 = sst [smem:[#allocation16_spill]] %s2773_s24  ;;  %s2919_s30 = sadd.s32 4294967295, %s2785_s27   ;;  %s2785_s27 = sphi %s2901_s27, %s3474_s27   ;;  %s2781_s26 = sphi %s2899_s26, %s3476_s26   ;;  %s2777_s25 = sphi %s2897_s25, %s3478_s25   ;;  %s2773_s24 = sphi %s2895_s24, %s3477_s24  }
  0x15   : > { %3446 = sst [smem:[#allocation17_spill]] %s2781_s26  ;;  %p2316_p0 = scmp.ge.s32.totalorder %s2785_s27, 1 }
  0x16   : > { %3447 = sst [smem:[#allocation18_spill]] %s2785_s27  ;;  %p59_p1 = scmp.eq.s32.totalorder %s2919_s30, 0 }
  0x17   : > { %s3448_s5 = sld [smem:[#allocation26_spill]]  ;;  %p461_p2 = scmp.lt.s32.totalorder %s2785_s27, 3 }
  0x18   : > { %s2787_s19 = smov [#allocation7]   ;;  %s3450_s6 = sld [smem:[#allocation27_spill]] }
  0x19   : > { %p2924_p3 = pnand %p2316_p0, %p461_p2  ;;  %s477_s1 = sshll.u32 %s2787_s19, 4  ;;  %s478_s1 = int_to_ptr.vmem [resolvable:$true] %s477_s1 }
  0x1a   : > { %s2788_s23 = smov [#allocation8]   ;;  %s2789_s29 = smov 64  }
  0x1b   : > { %p2443_p4 = pneg %p2924_p3  ;;  %s491_s28 = sshll.u32 %s2788_s23, 4  ;;  %s492_s28 = int_to_ptr.vmem [resolvable:$true] %s491_s28 }
  0x1c   : > { %s2790_s19 = smov 4   ;;  %s2315_s20 = sadd.s32 4294967294, %s2785_s27  }
  0x1d   : > { %s475_s0 = sshll.u32 %s3448_s5, 4  ;;  %p2444_p6 = pnand %p2443_p4, %p59_p1  ;;  %s476_s0 = int_to_ptr.hbm [resolvable:$true] %s475_s0 }
  0x1e   : > { %s489_s22 = sshll.u32 %s3450_s6, 4  ;;  %s2938_s21 = sadd.s32 1, %s2785_s27   ;;  %s490_s22 = int_to_ptr.hbm [resolvable:$true] %s489_s22 }
  0x1f   : > { %2446 = dma.hbm_to_vmem [thread:$0]  (!%p2444_p6), %s476_s0, 320, %s478_s1, [#allocation6], %s2789_s29, %s2789_s29, %s2790_s19  }
  0x20   : > { %2449 = dma.hbm_to_vmem [thread:$0]  (!%p2444_p6), %s490_s22, 320, %s492_s28, [#allocation9], %s2789_s29, %s2789_s29, %s2790_s19  }
  0x21   : > { %3451 = sst [smem:[#allocation19_spill]] %s2938_s21  ;;  %s42_s5 = ssub.s32 %s2785_s27, %s2938_s21 }
  0x22   : > { %s45_s6 = sadd.s32 1, %s2781_s26  ;;  %p43_p7 = scmp.eq.s32.totalorder %s42_s5, 0 }
  0x23   : > { %p52_p8 = scmp.ne.s32.totalorder %s2781_s26, %s2777_s25  ;;  %p53_p9 = scmp.eq.s32.totalorder %s2785_s27, 0 }
  0x24   : > { %p58_p10 = scmp.ne.s32.totalorder %s2777_s25, %s2773_s24  ;;  %p448_p13 = scmp.eq.s32.totalorder %s2919_s30, 1 }
  0x25   : > { %s2949_s23 = scalar_select %p43_p7, %s2781_s26, %s45_s6  }
  0x26   : > { %p2951_p11 = por %p53_p9, %p52_p8  ;;  %p2957_p12 = por %p59_p1, %p58_p10 }
  0x27   : > { %3452 = sst [smem:[#allocation20_spill]] %s2949_s23  ;;  %p454_p0 = scmp.eq.s32.totalorder %s2315_s20, 1 }
  0x28   : > { %p2463_p2 = scmp.lt.s32.totalorder %s2785_s27, 2  ;;  %s526_s5 = sand.u32 1, %s2781_s26  }
  0x29   : > { %p2964_p4 = por %p448_p13, %p52_p8  ;;  %p2968_p6 = por %p454_p0, %p58_p10 }
  0x2a   : > { %s2972_s22 = sshll.u32 %s526_s5, 3  ;;  %s2321_s28 = sshll.u32 %s2785_s27, 3 }
  0x2b   : > { %s3455_s1 = scalar_select %p2964_p4, 1, 0 }
  0x2c   : > { %s3457_s6 = scalar_select %p2968_p6, 1, 0 }
  0x2d   : > { %3456 = sst [smem:[#allocation21_spill]] %s3455_s1  ;;  %s530_s24 = scalar_lea.vmem [#allocation2], %s2972_s22 }
  0x2e   : > { %3458 = sst [smem:[#allocation22_spill]] %s3457_s6  ;;  %s538_s20 = sshll.u32 %s530_s24, 4  ;;  %s539_s20 = int_to_ptr.vmem [resolvable:$true] %s538_s20 }
  0x2f   : > { %s3459_s23 = sld [smem:[#allocation23_spill]]  ;;  %p2981_p7 = pnand %p2463_p2, %p2951_p11 }
  0x30   : > { %s3461_s14 = sld [smem:[#allocation24_spill]]  ;;  %s545_s13 = sand.u32 1, %s2785_s27  }
  0x31   : > { %s527_s12 = scalar_lea.sflag [#allocation3], %s526_s5  ;;  %p2651_p9 = pneg %p2981_p7 }
  0x35   : > { %s534_s21 = scalar_lea.hbm %s3459_s23, %s2321_s28 }
  0x36   : > { %s536_s17 = sshll.u32 %s534_s21, 4  ;;  %s553_s15 = scalar_lea.hbm %s3461_s14, %s2321_s28  ;;  %s537_s17 = int_to_ptr.hbm [resolvable:$true] %s536_s17 }
  0x37   : > { %s2647_s29 = sshra.s32 %s537_s17, 4  ;;  %s2654_s21 = scalar_lea.hbm %s3459_s23, 16  ;;  %s2648_s29 = int_to_ptr.hbm [resolvable:$true] %s2647_s29 }
  0x38   : > { %s2649_s19 = scalar_lea.hbm %s2648_s29, 8  ;;  %p2655_p13 = scmp.lt.s32.totalorder %s2648_s29, %s3459_s23 }
  0x39   : > { %p2650_p8 = scmp.ne.s32.totalorder %s2648_s29, %s2649_s19  ;;  %p2656_p0 = scmp.lt.s32.totalorder %s2654_s21, %s2649_s19 }
  0x3b   : > { %p2652_p10 = pnand %p2651_p9, %p2650_p8  ;;  %p2657_p2 = por %p2656_p0, %p2655_p13 }
  0x3d   : > { %p2653_p11 = pneg %p2652_p10 }
  0x3f   : > { %p2658_p5 = pnand %p2657_p2, %p2653_p11 }
  0x41   : > { %2661 = shalt.err (!%p2658_p5)
}
  0x42   : > { %2453 = dma.hbm_to_vmem [thread:$0]  (!%p2981_p7), %s537_s17, 128, %s539_s20, %s527_s12  }
  0x43   : > { %s555_s5 = sshll.u32 %s553_s15, 4  ;;  %s549_s28 = scalar_lea.vmem [#allocation5], %s2972_s22  ;;  %s556_s5 = int_to_ptr.hbm [resolvable:$true] %s555_s5 }
  0x44   : > { %s557_s27 = sshll.u32 %s549_s28, 4  ;;  %s546_s16 = scalar_lea.sflag [#allocation6], %s545_s13  ;;  %s558_s27 = int_to_ptr.vmem [resolvable:$true] %s557_s27 }
  0x45   : > { %s2677_s24 = sshra.s32 %s556_s5, 4  ;;  %s2684_s21 = scalar_lea.hbm %s3461_s14, 16  ;;  %s2678_s24 = int_to_ptr.hbm [resolvable:$true] %s2677_s24 }
  0x46   : > { %s2679_s2 = scalar_lea.hbm %s2678_s24, 8  ;;  %p2685_p5 = scmp.lt.s32.totalorder %s2678_s24, %s3461_s14 }
  0x47   : > { %p2680_p8 = scmp.ne.s32.totalorder %s2678_s24, %s2679_s2  ;;  %p2686_p13 = scmp.lt.s32.totalorder %s2684_s21, %s2679_s2 }
  0x49   : > { %p2682_p10 = pnand %p2680_p8, %p2651_p9  ;;  %p2687_p0 = por %p2686_p13, %p2685_p5 }
  0x4b   : > { %p2683_p11 = pneg %p2682_p10 }
  0x4d   : > { %p2688_p2 = pnand %p2687_p0, %p2683_p11 }
  0x4f   : > { %2691 = shalt.err (!%p2688_p2)
}
  0x50   : > { %2456 = dma.hbm_to_vmem [thread:$0]  (!%p2981_p7), %s556_s5, 128, %s558_s27, %s546_s16  }
  0x51   : > { %580 = sbr.rel (%p2924_p3) target bundleno = 5357 (0x14ed), region = 76  ;;  %s3017_s13 = sand.u32 (!%p2924_p3), 1, %s2777_s25  }
  0x52   : > { %s3020_s15 = sshll.u32 (!%p2924_p3), %s3017_s13, 3  ;;  %s583_s17 = scalar_lea.sflag (!%p2924_p3), [#allocation3], %s3017_s13 }
  0x53   : > { %s586_s2 = scalar_lea.vmem (!%p2924_p3), [#allocation2], %s3020_s15 }
  0x56   : > { %2752 = dma.done.wait (%p2957_p12), %s583_s17, 128  }
  0x57   : > { %2754 = vsyncadd (%p2957_p12), %s583_s17, 4294967168  ;;  %s592_s26 = sand.u32 1, %s2919_s30   ;;  %s596_s18 = scalar_lea.vmem [#allocation5], %s3020_s15 }
  0x58   : > { %s593_s27 = scalar_lea.sflag [#allocation6], %s592_s26 }
  0x59   : > { %2756 = dma.done.wait (%p2957_p12), %s593_s27, 128  }
  0x5a   : > { %2758 = vsyncadd (%p2957_p12), %s593_s27, 4294967168 }
  0x5b   : > { %2760 = dma.done.wait (%p59_p1), [#allocation6], 320  }
  0x5c   : > { %2762 = vsyncadd (%p59_p1), [#allocation6], 4294966976 }
  0x5d   : > { %2764 = dma.done.wait (%p59_p1), [#allocation9], 320  }
  0x5e   : > { %2766 = vsyncadd (%p59_p1), [#allocation9], 4294966976  ;;  %v2420_v0 = vld [vmem:[%s3409_s4] sm:$0xff]  ;;  %vm723_vm0 = vcmask 130048   ;;  %v708_v3 = vld [vmem:[%s3409_s4 + $0x8] sm:$0x1] }
  0x5f   : > { %v704_v1 = vld [vmem:[%s586_s2] sm:$0xff]  ;;  %734 = vmatpush.bf16.msra.mxu0 %v2420_v0  ;;  %v715_v4 = vunpack.c.l.bf16 %v708_v3  ;;  %s2791_s5 = smov 88   ;;  %s2792_s28 = smov 96   ;;  %vm746_vm1 = vcmask 64512   ;;  %vm786_vm2 = vcmask 1043456   ;;  %v3072_v24 = vld [vmem:[%s596_s18] sm:$0xff] }
  0x60   : > { %v714_v2 = vpack.c.bf16 %v704_v1, %v704_v1  ;;  %s2793_s16 = smov 120   ;;  %s2794_s24 = smov 80   ;;  %v709_v17 = vld [vmem:[#allocation7] sm:$0xf]  ;;  %vm767_vm3 = vcmp.gt.f32.partialorder %v3072_v24, 0.0  ;;  %vm1088_vm4 = vcmask 261120  }
  0x61   : > { %v716_v5 = vperm.slane %v715_v4, 0  ;;  %s2795_s29 = smov 112   ;;  %s2796_s19 = smov 72   ;;  %v886_v20 = vsel %vm786_vm2, %v709_v17, 0  ;;  %vm1822_vm5 = vcmask 48128   ;;  %vm1883_vm6 = vcmask 1042432  }
  0x62   : > { %2339 = vmatmul.msk.bf16.vlgmr.msra.gmra.mxu0 %vm723_vm0, %v714_v2  ;;  %s2797_s21 = smov 64   ;;  %s2798_s1 = smov 104   ;;  %vm2051_vm15 = vcmask 523264  }
  0x63   : > { %s2799_s12 = smov 40   ;;  %s2800_s17 = smov 56  }
  0x64   : > { %s2801_s2 = smov 48   ;;  %p683_p1 = scmp.lt.s32.totalorder %s2919_s30, 1 }
  0x65   : > { %s3462_s0 = sld [smem:[#allocation25_spill]]  ;;  %s2803_s20 = smov 12  }
  0x66   : > { %s3465_s18 = sld [smem:[#allocation31_spill]] }
  0xdf   : > { %v736_v6 = vpop.f32.mrf.mxu0 }
  0xe0   : > { %v737_v7 = vadd.f32 %v736_v6, %v716_v5 }
  0xe2   : > { %v740_v8 = vpack.c.bf16 %v737_v7, %v737_v7 }
  0xe4   : > { %v742_v9 = vunpack.c.l.b16 %v740_v8 }
  0xe6   : > { %v3048_v10 = vpack.c.b16 %v742_v9, %v742_v9 }
  0xe7   : > { %v738_v11 = vpop.f32.mrf.mxu0 }
  0xe8   : > { %806 = vrot.lane.b32.xlu2 %v3048_v10, %s2791_s5  ;;  %744 = vrot.lane.b32.xlu0 %v3048_v10, %s2792_s28 }
  0xf0   : > { %804 = vrot.lane.b32.xlu2 %v3048_v10, %s2793_s16 }
  0xf8   : > { %903 = vrot.lane.b32.xlu2 %v3048_v10, %s2794_s24 }
 0x100   : > { %901 = vrot.lane.b32.xlu2 %v3048_v10, %s2795_s29 }
 0x108   : > { %982 = vrot.lane.b32.xlu2 %v3048_v10, %s2796_s19 }
 0x142   : > { %v807_v12 = vpop.permute.xlu2 %806 }
 0x143   : > { %v812_v13 = vsel %vm746_vm1, %v807_v12, 0 }
 0x144   : > { %821 = vmatpush.bf16.xpose.msra.mxu3 %v812_v13 }
 0x14a   : > { %v805_v14 = vpop.permute.xlu2 %804 }
 0x14b   : > { %2342 = vmatmul.msk.bf16.vlgmr.msra.gmra.mxu3 %vm746_vm1, %v805_v14 }
 0x152   : > { %v904_v15 = vpop.permute.xlu2 %903 }
 0x153   : > { %v909_v16 = vsel %vm746_vm1, %v904_v15, 0 }
 0x154   : > { %918 = vmatpush.bf16.xpose.msrb.mxu3 %v909_v16 }
 0x15a   : > { %v902_v18 = vpop.permute.xlu2 %901  ;;  %v745_v19 = vpop.permute.xlu0 %744 }
 0x15b   : > { %2346 = vmatmul.msk.bf16.vlgmr.msrb.gmra.mxu3 %vm746_vm1, %v902_v18  ;;  %v751_v21 = vsel %vm746_vm1, %v745_v19, 0 }
 0x15c   : > { %760 = vmatpush.bf16.xpose.msra.mxu1 %v751_v21 }
 0x162   : > { %v983_v22 = vpop.permute.xlu2 %982 }
 0x163   : > { %v988_v23 = vsel %vm746_vm1, %v983_v22, 0  ;;  %2340 = vmatmul.msk.bf16.vlgmr.msra.gmra.mxu1 %vm746_vm1, %v740_v8 }
 0x164   : > { %895 = vmatpush.bf16.msrb.mxu1 %v886_v20 }
 0x168   : > { %997 = vmatpush.bf16.xpose.msra.mxu1 %v988_v23 }
 0x1ce   : > { %v823_v25 = vpop.f32.mrf.mxu3 }
 0x1cf   : > { %v827_v26 = vmul.f32 0.35355338, %v823_v25 }
 0x1d1   : > { %v828_v27 = vsel %vm767_vm3, %v827_v26, -1e+09 }
 0x1d2   : > { %v829_v28 = vsel %vm746_vm1, %v828_v27, -inf }
 0x1d3   : > { %830 = vmax.xlane.f32.xlu2 %v829_v28  ;;  %v710_v28 = vld [vmem:[#allocation7 + $0x4] sm:$0xf] }
 0x1d6   : > { %v825_v29 = vpop.f32.mrf.mxu3 }
 0x1d7   : > { %v867_v29 = vsel %vm786_vm2, %v710_v28, 0 }
 0x1de   : > { %v920_v30 = vpop.f32.mrf.mxu3 }
 0x1df   : > { %v924_v47 = vmul.f32 0.35355338, %v920_v30 }
 0x1e0   : > { %v762_v31 = vpop.f32.mrf.mxu1 }
 0x1e1   : > { %v766_v32 = vmul.f32 0.35355338, %v762_v31  ;;  %v925_v48 = vsel %vm767_vm3, %v924_v47, -1e+09  ;;  %v711_v31 = vld [vmem:[#allocation7 + $0x8] sm:$0xf] }
 0x1e2   : > { %v926_v49 = vsel %vm746_vm1, %v925_v48, -inf }
 0x1e3   : > { %v768_v33 = vsel %vm767_vm3, %v766_v32, -1e+09  ;;  %v964_v32 = vsel %vm786_vm2, %v711_v31, 0 }
 0x1e4   : > { %v769_v34 = vsel %vm746_vm1, %v768_v33, -inf }
 0x1e5   : > { %770 = vmax.xlane.f32.xlu0 %v769_v34 }
 0x1e6   : > { %v922_v35 = vpop.f32.mrf.mxu3 }
 0x1e8   : > { %v764_v36 = vpop.f32.mrf.mxu1 }
 0x246   : > { %v831_v37 = vpop.xlane.xlu2 %830 }
 0x247   : > { %v832_v38 = vsub.f32 %v828_v27, %v831_v37 }
 0x249   : > { %v833_v39 = vmul.f32 1.442695, %v832_v38 }
 0x24b   : > { %2517 = vpow2.f32 %v833_v39 }
 0x251   : > { %v3081_v40 = vpop.eup %2517 }
 0x252   : > { %v835_v41 = vsel %vm746_vm1, %v3081_v40, 0.0 }
 0x253   : > { %836 = vadd.xlane.f32.xlu0 %v835_v41 }
 0x258   : > { %v771_v42 = vpop.xlane.xlu0 %770 }
 0x259   : > { %v772_v43 = vsub.f32 %v768_v33, %v771_v42  ;;  %v712_v42 = vld [vmem:[#allocation7 + $0xc] sm:$0xf] }
 0x25b   : > { %v773_v44 = vmul.f32 1.442695, %v772_v43  ;;  %v1043_v43 = vsel %vm786_vm2, %v712_v42, 0 }
 0x25d   : > { %2519 = vpow2.f32 %v773_v44 }
 0x263   : > { %v2520_v45 = vpop.eup %2519 }
 0x264   : > { %v775_v46 = vsel %vm746_vm1, %v2520_v45, 0.0 }
 0x265   : > { %776 = vadd.xlane.f32.xlu1 %v775_v46 }
 0x27e   : > { %781 = vrot.lane.b32.xlu1 %v3048_v10, %s2797_s21 }
 0x286   : > { %980 = vrot.lane.b32.xlu1 %v3048_v10, %s2798_s1 }
 0x2b0   : > { %927 = vmax.xlane.f32.xlu1 %v926_v49 }
 0x2c6   : > { %v837_v12 = vpop.xlane.xlu0 %836 }
 0x2d8   : > { %v777_v50 = vpop.xlane.xlu1 %776 }
 0x2d9   : > { %2521 = vrcp.f32 %v777_v50 }
 0x2df   : > { %v2522_v51 = vpop.eup %2521 }
 0x2e0   : > { %v779_v52 = vmul.f32 %v2522_v51, %v2520_v45 }
 0x2e2   : > { %v780_v55 = vpack.c.bf16 %v779_v52, %v779_v52 }
 0x2f0   : > { %v782_v53 = vpop.permute.xlu1 %781 }
 0x2f1   : > { %v788_v54 = vsel %vm786_vm2, %v782_v53, 0  ;;  %v2422_v53 = vld [vmem:[#allocation8 + $0x8] sm:$0xff] }
 0x2f2   : > { %797 = vmatpush.bf16.msra.mxu2 %v788_v54  ;;  %v2421_v54 = vld [vmem:[#allocation8] sm:$0xff] }
 0x2f5   : > { %2341 = vmatmul.msk.bf16.vlgmr.msra.gmra.mxu2 %vm746_vm1, %v780_v55  ;;  %v713_v55 = vld [vmem:[#allocation7 + $0x10] sm:$0x1] }
 0x2f6   : > { %876 = vmatpush.bf16.msrb.mxu2 %v867_v29 }
 0x2f8   : > { %v981_v56 = vpop.permute.xlu1 %980 }
 0x2fa   : > { %973 = vmatpush.bf16.msra.mxu2 %v964_v32 }
 0x323   : > { %v928_v57 = vpop.xlane.xlu1 %927 }
 0x324   : > { %v929_v58 = vsub.f32 %v925_v48, %v928_v57 }
 0x326   : > { %v930_v59 = vmul.f32 1.442695, %v929_v58 }
 0x328   : > { %2523 = vpow2.f32 %v930_v59 }
 0x32e   : > { %v2524_v60 = vpop.eup %2523 }
 0x32f   : > { %v932_v61 = vsel %vm746_vm1, %v2524_v60, 0.0 }
 0x330   : > { %933 = vadd.xlane.f32.xlu2 %v932_v61 }
 0x348   : > { %1017 = vrot.lane.b32.xlu2 %v3048_v10, %s2799_s12 }
 0x378   : > { %v799_v62 = vpop.f32.mrf.mxu2 }
 0x379   : > { %v803_v63 = vpack.c.bf16 %v799_v62, %v799_v62 }
 0x37b   : > { %2345 = vmatmul.msk.bf16.vlgmr.msrb.gmra.mxu1 %vm746_vm1, %v803_v63 }
 0x380   : > { %v801_v0 = vpop.f32.mrf.mxu2 }
 0x381   : > { %v1067_v0 = vld [vmem:[#allocation8 + $0x10] sm:$0x1] }
 0x38b   : > { %2349 = vmatmul.msk.bf16.vlgmr.msra.gmra.mxu1 %vm746_vm1, %v981_v56  ;;  %v1059_v56 = vunpack.c.l.bf16 %v713_v55 }
 0x38d   : > { %v1060_v57 = vperm.slane %v1059_v56, 0 }
 0x3a3   : > { %v934_v1 = vpop.xlane.xlu2 %933 }
 0x3ab   : > { %v1018_v2 = vpop.permute.xlu2 %1017 }
 0x3ac   : > { %v1023_v3 = vsel %vm786_vm2, %v1018_v2, 0 }
 0x3ad   : > { %1032 = vmatpush.bf16.msra.mxu3 %v1023_v3 }
 0x3f8   : > { %v3101_v4 = vpop.f32.mrf.mxu1 }
 0x400   : > { %v899_v5 = vpop.f32.mrf.mxu1 }
 0x408   : > { %v999_v6 = vpop.f32.mrf.mxu1 }
 0x409   : > { %v1003_v7 = vmul.f32 0.35355338, %v999_v6 }
 0x40b   : > { %v1004_v8 = vsel %vm767_vm3, %v1003_v7, -1e+09 }
 0x40c   : > { %v1005_v9 = vsel %vm746_vm1, %v1004_v8, -inf }
 0x40d   : > { %1006 = vmax.xlane.f32.xlu0 %v1005_v9 }
 0x410   : > { %v1001_v11 = vpop.f32.mrf.mxu1 }
 0x421   : > { %841 = vrot.lane.b32.xlu0 %v3048_v10, %s2800_s17 }
 0x429   : > { %938 = vrot.lane.b32.xlu0 %v3048_v10, %s2801_s2 }
 0x480   : > { %v1007_v13 = vpop.xlane.xlu0 %1006 }
 0x481   : > { %v1008_v14 = vsub.f32 %v1004_v8, %v1007_v13 }
 0x483   : > { %v1009_v15 = vmul.f32 1.442695, %v1008_v14 }
 0x485   : > { %2525 = vpow2.f32 %v1009_v15 }
 0x486   : > { %2527 = vrcp.f32 %v837_v12 }
 0x487   : > { %2529 = vrcp.f32 %v934_v1  ;;  %v1074_v1 = vunpack.c.l.bf16 %v1067_v0 }
 0x489   : > { %v1075_v2 = vperm.slane %v1074_v1, 0 }
 0x48b   : > { %v2526_v16 = vpop.eup %2525 }
 0x48c   : > { %v1011_v17 = vsel %vm746_vm1, %v2526_v16, 0.0  ;;  %v2528_v18 = vpop.eup %2527 }
 0x48d   : > { %1012 = vadd.xlane.f32.xlu1 %v1011_v17  ;;  %v839_v19 = vmul.f32 %v2528_v18, %v3081_v40  ;;  %v2530_v25 = vpop.eup %2529 }
 0x48e   : > { %v936_v26 = vmul.f32 %v2530_v25, %v2524_v60 }
 0x48f   : > { %v840_v22 = vpack.c.bf16 %v839_v19, %v839_v19 }
 0x490   : > { %v937_v27 = vpack.c.bf16 %v936_v26, %v936_v26 }
 0x493   : > { %v842_v20 = vpop.permute.xlu0 %841 }
 0x494   : > { %v847_v21 = vsel %vm786_vm2, %v842_v20, 0 }
 0x495   : > { %856 = vmatpush.bf16.msrb.mxu0 %v847_v21 }
 0x498   : > { %2343 = vmatmul.msk.bf16.vlgmr.msrb.gmra.mxu0 %vm746_vm1, %v840_v22 }
 0x49b   : > { %v939_v10 = vpop.permute.xlu0 %938 }
 0x49c   : > { %v944_v23 = vsel %vm786_vm2, %v939_v10, 0 }
 0x49d   : > { %953 = vmatpush.bf16.msra.mxu0 %v944_v23 }
 0x4a1   : > { %1052 = vmatpush.bf16.msrb.mxu0 %v1043_v43 }
 0x4a8   : > { %2347 = vmatmul.msk.bf16.vlgmr.msra.gmra.mxu0 %vm746_vm1, %v937_v27 }
 0x500   : > { %v1013_v30 = vpop.xlane.xlu1 %1012 }
 0x501   : > { %2531 = vrcp.f32 %v1013_v30 }
 0x507   : > { %v2532_v33 = vpop.eup %2531 }
 0x508   : > { %v1015_v34 = vmul.f32 %v2532_v33, %v2526_v16 }
 0x50a   : > { %v1016_v35 = vpack.c.bf16 %v1015_v34, %v1015_v34 }
 0x50c   : > { %2350 = vmatmul.msk.bf16.vlgmr.msra.gmra.mxu3 %vm746_vm1, %v1016_v35 }
 0x515   : > { %v858_v36 = vpop.f32.mrf.mxu0 }
 0x516   : > { %v862_v37 = vpack.c.bf16 %v858_v36, %v858_v36 }
 0x518   : > { %2344 = vmatmul.msk.bf16.vlgmr.msrb.gmra.mxu2 %vm746_vm1, %v862_v37 }
 0x519   : > { %1098 = vmatpush.bf16.msrb.mxu2 %v2422_v53 }
 0x51d   : > { %v860_v38 = vpop.f32.mrf.mxu0  ;;  %1099 = vmatpush.bf16.msrb.mxu2 %v2421_v54 }
 0x525   : > { %v955_v39 = vpop.f32.mrf.mxu0 }
 0x526   : > { %v959_v40 = vpack.c.bf16 %v955_v39, %v955_v39 }
 0x528   : > { %2348 = vmatmul.msk.bf16.vlgmr.msra.gmra.mxu2 %vm746_vm1, %v959_v40  ;;  %v1068_v40 = vld [vmem:[%s3412_s7] sm:$0xf] }
 0x52d   : > { %v957_v41 = vpop.f32.mrf.mxu0 }
 0x52e   : > { %v1248_v41 = vsel %vm786_vm2, %v1068_v40, 0 }
 0x58f   : > { %v1034_v44 = vpop.f32.mrf.mxu3 }
 0x590   : > { %v1038_v45 = vpack.c.bf16 %v1034_v44, %v1034_v44 }
 0x592   : > { %2351 = vmatmul.msk.bf16.vlgmr.msrb.gmra.mxu0 %vm746_vm1, %v1038_v45 }
 0x597   : > { %v1036_v46 = vpop.f32.mrf.mxu3 }
 0x59b   : > { %v878_v47 = vpop.f32.mrf.mxu2 }
 0x59c   : > { %v898_v49 = vadd.f32 %v3101_v4, %v878_v47 }
 0x5a3   : > { %v880_v48 = vpop.f32.mrf.mxu2 }
 0x5ab   : > { %v975_v50 = vpop.f32.mrf.mxu2 }
 0x5ac   : > { %v979_v51 = vadd.f32 %v975_v50, %v898_v49 }
 0x5b3   : > { %v977_v52 = vpop.f32.mrf.mxu2 }
 0x60f   : > { %v1054_v58 = vpop.f32.mrf.mxu0 }
 0x610   : > { %v1058_v59 = vadd.f32 %v1054_v58, %v979_v51 }
 0x612   : > { %v1061_v60 = vadd.f32 %v1060_v57, %v1058_v59 }
 0x614   : > { %v1062_v61 = vmax.f32 %v1061_v60, 0.0 }
 0x616   : > { %v1073_v62 = vpack.c.bf16 %v1062_v61, %v1062_v61 }
 0x617   : > { %v1056_v63 = vpop.f32.mrf.mxu0 }
 0x618   : > { %2360 = vmatmul.msk.bf16.vlgmr.msrb.gmra.mxu2 %vm1088_vm4, %v1073_v62 }
 0x69b   : > { %v1101_v3 = vpop.f32.mrf.mxu2 }
 0x69c   : > { %v1102_v4 = vadd.f32 %v1101_v3, %v1075_v2 }
 0x69e   : > { %v1105_v5 = vpack.c.bf16 %v1102_v4, %v1102_v4 }
 0x6a0   : > { %v1107_v6 = vunpack.c.l.b16 %v1105_v5 }
 0x6a2   : > { %v3125_v7 = vpack.c.b16 %v1107_v6, %v1107_v6 }
 0x6a3   : > { %v1103_v8 = vpop.f32.mrf.mxu2 }
 0x6a4   : > { %1109 = vrot.lane.b32.xlu1 %v3125_v7, %s2792_s28 }
 0x6ac   : > { %1144 = vrot.lane.b32.xlu1 %v3125_v7, %s2797_s21 }
 0x6b4   : > { %1168 = vrot.lane.b32.xlu1 %v3125_v7, %s2791_s5 }
 0x6bc   : > { %1166 = vrot.lane.b32.xlu1 %v3125_v7, %s2793_s16 }
 0x6c4   : > { %1265 = vrot.lane.b32.xlu1 %v3125_v7, %s2794_s24 }
 0x6cc   : > { %1342 = vrot.lane.b32.xlu1 %v3125_v7, %s2798_s1 }
 0x716   : > { %v1110_v9 = vpop.permute.xlu1 %1109 }
 0x717   : > { %v1115_v11 = vsel %vm746_vm1, %v1110_v9, 0 }
 0x718   : > { %1124 = vmatpush.bf16.xpose.msrb.mxu1 %v1115_v11 }
 0x71e   : > { %v1145_v12 = vpop.permute.xlu1 %1144 }
 0x71f   : > { %v1150_v13 = vsel %vm786_vm2, %v1145_v12, 0  ;;  %2361 = vmatmul.msk.bf16.vlgmr.msrb.gmra.mxu1 %vm746_vm1, %v1105_v5 }
 0x720   : > { %1159 = vmatpush.bf16.msrb.mxu3 %v1150_v13  ;;  %v1069_v13 = vld [vmem:[%s3412_s7 + $0x4] sm:$0xf] }
 0x724   : > { %1257 = vmatpush.bf16.msra.mxu3 %v1248_v41  ;;  %v1071_v41 = vld [vmem:[%s3412_s7 + $0xc] sm:$0xf] }
 0x726   : > { %v1169_v14 = vpop.permute.xlu1 %1168 }
 0x727   : > { %v1174_v15 = vsel %vm746_vm1, %v1169_v14, 0  ;;  %v1229_v14 = vsel %vm786_vm2, %v1069_v13, 0 }
 0x728   : > { %1183 = vmatpush.bf16.xpose.msra.mxu0 %v1174_v15  ;;  %1238 = vmatpush.bf16.msra.mxu1 %v1229_v14 }
 0x72e   : > { %v1167_v16 = vpop.permute.xlu1 %1166 }
 0x72f   : > { %2363 = vmatmul.msk.bf16.vlgmr.msra.gmra.mxu0 %vm746_vm1, %v1167_v16 }
 0x736   : > { %v1266_v17 = vpop.permute.xlu1 %1265 }
 0x737   : > { %v1271_v18 = vsel %vm746_vm1, %v1266_v17, 0 }
 0x738   : > { %1280 = vmatpush.bf16.xpose.msrb.mxu0 %v1271_v18 }
 0x73e   : > { %v1343_v56 = vpop.permute.xlu1 %1342 }
 0x79c   : > { %v1126_v19 = vpop.f32.mrf.mxu1 }
 0x79d   : > { %v1130_v20 = vmul.f32 0.35355338, %v1126_v19 }
 0x79f   : > { %v1131_v21 = vsel %vm767_vm3, %v1130_v20, -1e+09 }
 0x7a0   : > { %v1132_v22 = vsel %vm746_vm1, %v1131_v21, -inf }
 0x7a1   : > { %1133 = vmax.xlane.f32.xlu0 %v1132_v22 }
 0x7a4   : > { %v1128_v10 = vpop.f32.mrf.mxu1 }
 0x7ac   : > { %v1185_v23 = vpop.f32.mrf.mxu0 }
 0x7ad   : > { %v1189_v26 = vmul.f32 0.35355338, %v1185_v23 }
 0x7af   : > { %v1190_v27 = vsel %vm767_vm3, %v1189_v26, -1e+09 }
 0x7b0   : > { %v1191_v28 = vsel %vm746_vm1, %v1190_v27, -inf }
 0x7b4   : > { %v1187_v25 = vpop.f32.mrf.mxu0 }
 0x7b5   : > { %1344 = vrot.lane.b32.xlu0 %v3125_v7, %s2796_s19 }
 0x7df   : > { %1192 = vmax.xlane.f32.xlu0 %v1191_v28 }
 0x814   : > { %v1134_v29 = vpop.xlane.xlu0 %1133 }
 0x815   : > { %v1135_v30 = vsub.f32 %v1131_v21, %v1134_v29  ;;  %v1070_v29 = vld [vmem:[%s3412_s7 + $0x8] sm:$0xf] }
 0x817   : > { %v1136_v31 = vmul.f32 1.442695, %v1135_v30  ;;  %v1326_v30 = vsel %vm786_vm2, %v1070_v29, 0 }
 0x818   : > { %1335 = vmatpush.bf16.msrb.mxu1 %v1326_v30 }
 0x819   : > { %2533 = vpow2.f32 %v1136_v31 }
 0x81f   : > { %v2534_v32 = vpop.eup %2533 }
 0x820   : > { %v1138_v33 = vsel %vm746_vm1, %v2534_v32, 0.0 }
 0x821   : > { %1139 = vadd.xlane.f32.xlu2 %v1138_v33 }
 0x827   : > { %v1345_v34 = vpop.permute.xlu0 %1344 }
 0x828   : > { %v1350_v47 = vsel %vm746_vm1, %v1345_v34, 0 }
 0x839   : > { %1263 = vrot.lane.b32.xlu2 %v3125_v7, %s2795_s29 }
 0x852   : > { %v1193_v35 = vpop.xlane.xlu0 %1192 }
 0x853   : > { %v1194_v36 = vsub.f32 %v1190_v27, %v1193_v35 }
 0x855   : > { %v1195_v37 = vmul.f32 1.442695, %v1194_v36 }
 0x857   : > { %2535 = vpow2.f32 %v1195_v37 }
 0x85d   : > { %v2536_v38 = vpop.eup %2535 }
 0x85e   : > { %v1197_v39 = vsel %vm746_vm1, %v2536_v38, 0.0 }
 0x85f   : > { %1198 = vadd.xlane.f32.xlu0 %v1197_v39 }
 0x894   : > { %v1140_v42 = vpop.xlane.xlu2 %1139 }
 0x895   : > { %2537 = vrcp.f32 %v1140_v42  ;;  %v1405_v42 = vsel %vm786_vm2, %v1071_v41, 0 }
 0x89b   : > { %v2538_v43 = vpop.eup %2537 }
 0x89c   : > { %v1142_v44 = vmul.f32 %v2538_v43, %v2534_v32  ;;  %v1264_v45 = vpop.permute.xlu2 %1263 }
 0x89d   : > { %2367 = vmatmul.msk.bf16.vlgmr.msrb.gmra.mxu0 %vm746_vm1, %v1264_v45 }
 0x89e   : > { %v1143_v46 = vpack.c.bf16 %v1142_v44, %v1142_v44 }
 0x8a0   : > { %2362 = vmatmul.msk.bf16.vlgmr.msrb.gmra.mxu3 %vm746_vm1, %v1143_v46 }
 0x8a1   : > { %1359 = vmatpush.bf16.xpose.msrb.mxu3 %v1350_v47 }
 0x8d2   : > { %v1199_v61 = vpop.xlane.xlu0 %1198 }
 0x91a   : > { %v1282_v48 = vpop.f32.mrf.mxu0 }
 0x91b   : > { %v1286_v49 = vmul.f32 0.35355338, %v1282_v48 }
 0x91d   : > { %v1287_v50 = vsel %vm767_vm3, %v1286_v49, -1e+09 }
 0x91e   : > { %v1288_v51 = vsel %vm746_vm1, %v1287_v50, -inf }
 0x91f   : > { %1289 = vmax.xlane.f32.xlu1 %v1288_v51  ;;  %v2423_v51 = vld [vmem:[%s3413_s8] sm:$0xff] }
 0x922   : > { %v1284_v52 = vpop.f32.mrf.mxu0 }
 0x923   : > { %v1161_v53 = vpop.f32.mrf.mxu3  ;;  %v1072_v52 = vld [vmem:[%s3412_s7 + $0x10] sm:$0x1] }
 0x924   : > { %v1165_v54 = vpack.c.bf16 %v1161_v53, %v1161_v53  ;;  %v1421_v53 = vunpack.c.l.bf16 %v1072_v52 }
 0x926   : > { %2366 = vmatmul.msk.bf16.vlgmr.msra.gmra.mxu3 %vm746_vm1, %v1165_v54  ;;  %v1422_v54 = vperm.slane %v1421_v53, 0 }
 0x92b   : > { %v1163_v55 = vpop.f32.mrf.mxu3 }
 0x936   : > { %2370 = vmatmul.msk.bf16.vlgmr.msrb.gmra.mxu3 %vm746_vm1, %v1343_v56 }
 0x938   : > { %1203 = vrot.lane.b32.xlu1 %v3125_v7, %s2800_s17 }
 0x992   : > { %v1290_v57 = vpop.xlane.xlu1 %1289 }
 0x993   : > { %v1291_v58 = vsub.f32 %v1287_v50, %v1290_v57  ;;  %v2424_v50 = vld [vmem:[%s3413_s8 + $0x8] sm:$0xff] }
 0x995   : > { %v1292_v59 = vmul.f32 1.442695, %v1291_v58 }
 0x997   : > { %2539 = vpow2.f32 %v1292_v59 }
 0x998   : > { %2541 = vrcp.f32 %v1199_v61  ;;  %v1429_v61 = vld [vmem:[%s3413_s8 + $0x10] sm:$0x1] }
 0x99d   : > { %v2540_v60 = vpop.eup %2539 }
 0x99e   : > { %v1294_v62 = vsel %vm746_vm1, %v2540_v60, 0.0  ;;  %v2542_v63 = vpop.eup %2541 }
 0x99f   : > { %1295 = vadd.xlane.f32.xlu0 %v1294_v62  ;;  %v1201_v0 = vmul.f32 %v2542_v63, %v2536_v38  ;;  %v1436_v62 = vunpack.c.l.bf16 %v1429_v61 }
 0x9a1   : > { %v1202_v4 = vpack.c.bf16 %v1201_v0, %v1201_v0  ;;  %v1437_v63 = vperm.slane %v1436_v62, 0 }
 0x9a9   : > { %v1259_v1 = vpop.f32.mrf.mxu3 }
 0x9aa   : > { %v1204_v2 = vpop.permute.xlu1 %1203 }
 0x9ab   : > { %v1209_v3 = vsel %vm786_vm2, %v1204_v2, 0 }
 0x9ac   : > { %1218 = vmatpush.bf16.msra.mxu2 %v1209_v3 }
 0x9af   : > { %2364 = vmatmul.msk.bf16.vlgmr.msra.gmra.mxu2 %vm746_vm1, %v1202_v4 }
 0x9b1   : > { %v1261_v5 = vpop.f32.mrf.mxu3 }
 0x9b9   : > { %v1361_v6 = vpop.f32.mrf.mxu3 }
 0x9ba   : > { %v1365_v8 = vmul.f32 0.35355338, %v1361_v6 }
 0x9bc   : > { %v1366_v9 = vsel %vm767_vm3, %v1365_v8, -1e+09 }
 0x9bd   : > { %v1367_v11 = vsel %vm746_vm1, %v1366_v9, -inf }
 0x9be   : > { %1368 = vmax.xlane.f32.xlu2 %v1367_v11 }
 0x9c1   : > { %v1363_v12 = vpop.f32.mrf.mxu3 }
 0x9d6   : > { %1300 = vrot.lane.b32.xlu2 %v3125_v7, %s2801_s2 }
 0xa12   : > { %v1296_v15 = vpop.xlane.xlu0 %1295 }
 0xa13   : > { %2543 = vrcp.f32 %v1296_v15 }
 0xa19   : > { %v2544_v21 = vpop.eup %2543 }
 0xa1a   : > { %v1298_v22 = vmul.f32 %v2544_v21, %v2540_v60 }
 0xa1c   : > { %v1299_v27 = vpack.c.bf16 %v1298_v22, %v1298_v22 }
 0xa31   : > { %v1369_v16 = vpop.xlane.xlu2 %1368 }
 0xa32   : > { %v1370_v17 = vsub.f32 %v1366_v9, %v1369_v16  ;;  %v1220_v18 = vpop.f32.mrf.mxu2 }
 0xa33   : > { %v1224_v19 = vpack.c.bf16 %v1220_v18, %v1220_v18 }
 0xa34   : > { %v1371_v20 = vmul.f32 1.442695, %v1370_v17 }
 0xa35   : > { %2365 = vmatmul.msk.bf16.vlgmr.msra.gmra.mxu1 %vm746_vm1, %v1224_v19 }
 0xa36   : > { %2545 = vpow2.f32 %v1371_v20  ;;  %1459 = vmatpush.bf16.msra.mxu1 %v2424_v50 }
 0xa39   : > { %v1301_v10 = vpop.permute.xlu2 %1300 }
 0xa3a   : > { %v1306_v23 = vsel %vm786_vm2, %v1301_v10, 0  ;;  %v1222_v25 = vpop.f32.mrf.mxu2  ;;  %1460 = vmatpush.bf16.msra.mxu1 %v2423_v51 }
 0xa3b   : > { %1315 = vmatpush.bf16.msrb.mxu2 %v1306_v23 }
 0xa3c   : > { %v2546_v26 = vpop.eup %2545 }
 0xa3d   : > { %v1373_v28 = vsel %vm746_vm1, %v2546_v26, 0.0 }
 0xa3e   : > { %1374 = vadd.xlane.f32.xlu0 %v1373_v28  ;;  %2368 = vmatmul.msk.bf16.vlgmr.msrb.gmra.mxu2 %vm746_vm1, %v1299_v27 }
 0xa3f   : > { %1414 = vmatpush.bf16.msra.mxu2 %v1405_v42 }
 0xa52   : > { %1379 = vrot.lane.b32.xlu0 %v3125_v7, %s2799_s12 }
 0xab1   : > { %v1375_v32 = vpop.xlane.xlu0 %1374 }
 0xab2   : > { %v1240_v31 = vpop.f32.mrf.mxu1  ;;  %2547 = vrcp.f32 %v1375_v32 }
 0xab3   : > { %v1260_v43 = vadd.f32 %v1259_v1, %v1240_v31 }
 0xab8   : > { %v2548_v34 = vpop.eup %2547 }
 0xab9   : > { %v1377_v37 = vmul.f32 %v2548_v34, %v2546_v26 }
 0xaba   : > { %v1242_v33 = vpop.f32.mrf.mxu1 }
 0xabb   : > { %v1378_v39 = vpack.c.bf16 %v1377_v37, %v1377_v37  ;;  %v1430_v33 = vld [vmem:[%s3414_s9] sm:$0xf] }
 0xabc   : > { %v1609_v34 = vsel %vm786_vm2, %v1430_v33, 0 }
 0xac1   : > { %v1317_v35 = vpop.f32.mrf.mxu2 }
 0xac2   : > { %v1321_v36 = vpack.c.bf16 %v1317_v35, %v1317_v35 }
 0xac4   : > { %2369 = vmatmul.msk.bf16.vlgmr.msrb.gmra.mxu1 %vm746_vm1, %v1321_v36  ;;  %v1380_v38 = vpop.permute.xlu0 %1379 }
 0xac5   : > { %v1385_v7 = vsel %vm786_vm2, %v1380_v38, 0 }
 0xac6   : > { %1394 = vmatpush.bf16.msra.mxu0 %v1385_v7 }
 0xac9   : > { %v1319_v40 = vpop.f32.mrf.mxu2  ;;  %2371 = vmatmul.msk.bf16.vlgmr.msra.gmra.mxu0 %vm746_vm1, %v1378_v39 }
 0xb41   : > { %v1337_v44 = vpop.f32.mrf.mxu1 }
 0xb42   : > { %v1341_v45 = vadd.f32 %v1337_v44, %v1260_v43 }
 0xb46   : > { %v1396_v46 = vpop.f32.mrf.mxu0 }
 0xb47   : > { %v1400_v47 = vpack.c.bf16 %v1396_v46, %v1396_v46 }
 0xb49   : > { %v1339_v48 = vpop.f32.mrf.mxu1  ;;  %2372 = vmatmul.msk.bf16.vlgmr.msra.gmra.mxu2 %vm746_vm1, %v1400_v47 }
 0xb4e   : > { %v1398_v49 = vpop.f32.mrf.mxu0 }
 0xbcc   : > { %v1416_v55 = vpop.f32.mrf.mxu2 }
 0xbcd   : > { %v1420_v56 = vadd.f32 %v1416_v55, %v1341_v45 }
 0xbcf   : > { %v1423_v57 = vadd.f32 %v1422_v54, %v1420_v56 }
 0xbd1   : > { %v1424_v58 = vmax.f32 %v1423_v57, 0.0 }
 0xbd3   : > { %v1435_v59 = vpack.c.bf16 %v1424_v58, %v1424_v58 }
 0xbd4   : > { %v1418_v60 = vpop.f32.mrf.mxu2 }
 0xbd5   : > { %2381 = vmatmul.msk.bf16.vlgmr.msra.gmra.mxu1 %vm1088_vm4, %v1435_v59 }
 0xc52   : > { %v1462_v0 = vpop.f32.mrf.mxu1 }
 0xc53   : > { %v1463_v1 = vadd.f32 %v1462_v0, %v1437_v63 }
 0xc55   : > { %v1466_v2 = vpack.c.bf16 %v1463_v1, %v1463_v1 }
 0xc57   : > { %v1468_v3 = vunpack.c.l.b16 %v1466_v2 }
 0xc59   : > { %v3214_v4 = vpack.c.b16 %v1468_v3, %v1468_v3 }
 0xc5a   : > { %v1464_v5 = vpop.f32.mrf.mxu1 }
 0xc5b   : > { %1505 = vrot.lane.b32.xlu2 %v3214_v4, %s2797_s21  ;;  %1470 = vrot.lane.b32.xlu1 %v3214_v4, %s2792_s28 }
 0xc63   : > { %1529 = vrot.lane.b32.xlu2 %v3214_v4, %s2791_s5  ;;  %s2417_s5 = sshll.u32 %s2919_s30, 3 }
 0xc6b   : > { %1527 = vrot.lane.b32.xlu2 %v3214_v4, %s2793_s16  ;;  %s3463_s16 = sld [smem:[#allocation28_spill]] }
 0xc73   : > { %1626 = vrot.lane.b32.xlu2 %v3214_v4, %s2794_s24 }
 0xc7b   : > { %1705 = vrot.lane.b32.xlu2 %v3214_v4, %s2796_s19 }
 0xc83   : > { %1703 = vrot.lane.b32.xlu2 %v3214_v4, %s2798_s1  ;;  %s2802_s1 = smov 32  }
 0xcb5   : > { %v1506_v6 = vpop.permute.xlu2 %1505 }
 0xcb6   : > { %v1511_v8 = vsel %vm786_vm2, %v1506_v6, 0 }
 0xcb7   : > { %1520 = vmatpush.bf16.msrb.mxu0 %v1511_v8 }
 0xcbb   : > { %1618 = vmatpush.bf16.msra.mxu0 %v1609_v34 }
 0xcbd   : > { %v1530_v9 = vpop.permute.xlu2 %1529 }
 0xcbe   : > { %v1535_v11 = vsel %vm746_vm1, %v1530_v9, 0 }
 0xcbf   : > { %1544 = vmatpush.bf16.xpose.msrb.mxu2 %v1535_v11 }
 0xcc5   : > { %v1528_v12 = vpop.permute.xlu2 %1527 }
 0xcc6   : > { %2384 = vmatmul.msk.bf16.vlgmr.msrb.gmra.mxu2 %vm746_vm1, %v1528_v12 }
 0xccd   : > { %v1627_v13 = vpop.permute.xlu2 %1626  ;;  %v1471_v14 = vpop.permute.xlu1 %1470 }
 0xcce   : > { %v1632_v15 = vsel %vm746_vm1, %v1627_v13, 0  ;;  %v1476_v16 = vsel %vm746_vm1, %v1471_v14, 0 }
 0xccf   : > { %1485 = vmatpush.bf16.xpose.msra.mxu3 %v1476_v16  ;;  %1641 = vmatpush.bf16.xpose.msra.mxu2 %v1632_v15 }
 0xcd5   : > { %v1706_v7 = vpop.permute.xlu2 %1705 }
 0xcd6   : > { %2382 = vmatmul.msk.bf16.vlgmr.msra.gmra.mxu3 %vm746_vm1, %v1466_v2  ;;  %v1711_v42 = vsel %vm746_vm1, %v1706_v7, 0 }
 0xcdd   : > { %v1704_v53 = vpop.permute.xlu2 %1703 }
 0xd49   : > { %v1546_v17 = vpop.f32.mrf.mxu2 }
 0xd4a   : > { %v1550_v29 = vmul.f32 0.35355338, %v1546_v17 }
 0xd4c   : > { %v1551_v30 = vsel %vm767_vm3, %v1550_v29, -1e+09 }
 0xd4d   : > { %v1552_v31 = vsel %vm746_vm1, %v1551_v30, -inf }
 0xd51   : > { %v1548_v18 = vpop.f32.mrf.mxu2 }
 0xd59   : > { %v1487_v19 = vpop.f32.mrf.mxu3 }
 0xd5a   : > { %v1491_v20 = vmul.f32 0.35355338, %v1487_v19 }
 0xd5c   : > { %v1492_v21 = vsel %vm767_vm3, %v1491_v20, -1e+09 }
 0xd5d   : > { %v1493_v22 = vsel %vm746_vm1, %v1492_v21, -inf }
 0xd5e   : > { %1494 = vmax.xlane.f32.xlu1 %v1493_v22 }
 0xd61   : > { %v1489_v10 = vpop.f32.mrf.mxu3 }
 0xd77   : > { %1624 = vrot.lane.b32.xlu1 %v3214_v4, %s2795_s29  ;;  %s3467_s29 = sld [smem:[#allocation33_spill]] }
 0xdd1   : > { %v1495_v23 = vpop.xlane.xlu1 %1494 }
 0xdd2   : > { %v1496_v25 = vsub.f32 %v1492_v21, %v1495_v23  ;;  %v1431_v21 = vld [vmem:[%s3414_s9 + $0x4] sm:$0xf] }
 0xdd3   : > { %v1590_v22 = vsel %vm786_vm2, %v1431_v21, 0 }
 0xdd4   : > { %v1497_v26 = vmul.f32 1.442695, %v1496_v25  ;;  %1599 = vmatpush.bf16.msrb.mxu3 %v1590_v22 }
 0xdd6   : > { %2549 = vpow2.f32 %v1497_v26 }
 0xddc   : > { %v2550_v27 = vpop.eup %2549 }
 0xddd   : > { %v1499_v28 = vsel %vm746_vm1, %v2550_v27, 0.0 }
 0xdde   : > { %1500 = vadd.xlane.f32.xlu0 %v1499_v28 }
 0xde6   : > { %1553 = vmax.xlane.f32.xlu0 %v1552_v31  ;;  %v1432_v31 = vld [vmem:[%s3414_s9 + $0x8] sm:$0xf] }
 0xde9   : > { %v1625_v32 = vpop.permute.xlu1 %1624 }
 0xdea   : > { %2388 = vmatmul.msk.bf16.vlgmr.msra.gmra.mxu2 %vm746_vm1, %v1625_v32  ;;  %v1687_v32 = vsel %vm786_vm2, %v1432_v31, 0  ;;  %v1878_v31 = vld [vmem:[%s3416_s11 + $0x10] sm:$0x1] }
 0xdeb   : > { %1696 = vmatpush.bf16.msra.mxu3 %v1687_v32 }
 0xe51   : > { %v1501_v35 = vpop.xlane.xlu0 %1500 }
 0xe52   : > { %2551 = vrcp.f32 %v1501_v35 }
 0xe58   : > { %v2552_v36 = vpop.eup %2551 }
 0xe59   : > { %v1503_v37 = vmul.f32 %v2552_v36, %v2550_v27  ;;  %v1554_v38 = vpop.xlane.xlu0 %1553  ;;  %v1433_v36 = vld [vmem:[%s3414_s9 + $0xc] sm:$0xf] }
 0xe5a   : > { %v1555_v39 = vsub.f32 %v1551_v30, %v1554_v38 }
 0xe5b   : > { %v1504_v40 = vpack.c.bf16 %v1503_v37, %v1503_v37  ;;  %v1766_v37 = vsel %vm786_vm2, %v1433_v36, 0 }
 0xe5c   : > { %v1556_v41 = vmul.f32 1.442695, %v1555_v39 }
 0xe5d   : > { %2383 = vmatmul.msk.bf16.vlgmr.msrb.gmra.mxu0 %vm746_vm1, %v1504_v40 }
 0xe5e   : > { %2553 = vpow2.f32 %v1556_v41  ;;  %1720 = vmatpush.bf16.xpose.msrb.mxu0 %v1711_v42 }
 0xe64   : > { %v2554_v43 = vpop.eup %2553 }
 0xe65   : > { %v1558_v44 = vsel %vm746_vm1, %v2554_v43, 0.0 }
 0xe66   : > { %1559 = vadd.xlane.f32.xlu1 %v1558_v44 }
 0xe6d   : > { %v1643_v45 = vpop.f32.mrf.mxu2 }
 0xe6e   : > { %v1647_v46 = vmul.f32 0.35355338, %v1643_v45 }
 0xe70   : > { %v1648_v47 = vsel %vm767_vm3, %v1647_v46, -1e+09  ;;  %v2426_v46 = vld [vmem:[%s3415_s10 + $0x8] sm:$0xff] }
 0xe71   : > { %v1649_v48 = vsel %vm746_vm1, %v1648_v47, -inf }
 0xe72   : > { %1650 = vmax.xlane.f32.xlu2 %v1649_v48  ;;  %v2425_v48 = vld [vmem:[%s3415_s10] sm:$0xff] }
 0xe75   : > { %v1645_v49 = vpop.f32.mrf.mxu2 }
 0xe76   : > { %v2427_v49 = vld [vmem:[%s3416_s11] sm:$0xff] }
 0xe7f   : > { %1661 = vrot.lane.b32.xlu1 %v3214_v4, %s2801_s2  ;;  %s684_s2 = scalar_select %p683_p1, %s2919_s30, 1 }
 0xe80   : > { %s2083_s30 = scalar_lea.sflag [#allocation4], %s3017_s13 }
 0xe81   : > { %s3301_s6 = sshll.u32 %s684_s2, 3 }
 0xe82   : > { %s690_s19 = scalar_lea.vmem %s3408_s3, %s3301_s6  ;;  %s686_s26 = scalar_lea.vmem %s3462_s0, %s3301_s6 }
 0xe83   : > { %s698_s22 = scalar_lea.vmem %s3465_s18, %s3301_s6 }
 0xed9   : > { %v1560_v24 = vpop.xlane.xlu1 %1559 }
 0xeda   : > { %v1522_v50 = vpop.f32.mrf.mxu0 }
 0xedb   : > { %v1526_v51 = vpack.c.bf16 %v1522_v50, %v1522_v50  ;;  %v1962_v50 = vld [vmem:[%s690_s19] sm:$0xff]  ;;  %s3464_s19 = sld [smem:[#allocation29_spill]] }
 0xedc   : > { %1964 = vrot.lane.b32.xlu1 %v1962_v50, %s2802_s1  ;;  %s682_s1 = scalar_lea.vmem [#allocation10], %s3020_s15 }
 0xedd   : > { %2387 = vmatmul.msk.bf16.vlgmr.msra.gmra.mxu0 %vm746_vm1, %v1526_v51  ;;  %v1434_v51 = vld [vmem:[%s3414_s9 + $0x10] sm:$0x1] }
 0xee2   : > { %v1524_v52 = vpop.f32.mrf.mxu0 }
 0xee3   : > { %v1782_v52 = vunpack.c.l.bf16 %v1434_v51 }
 0xee5   : > { %v1651_v61 = vpop.xlane.xlu2 %1650 }
 0xee6   : > { %v1652_v62 = vsub.f32 %v1648_v47, %v1651_v61  ;;  %v2428_v47 = vld [vmem:[%s3416_s11 + $0x8] sm:$0xff] }
 0xee8   : > { %v1653_v63 = vmul.f32 1.442695, %v1652_v62 }
 0xeea   : > { %2555 = vpow2.f32 %v1653_v63 }
 0xeed   : > { %2391 = vmatmul.msk.bf16.vlgmr.msrb.gmra.mxu0 %vm746_vm1, %v1704_v53  ;;  %v1783_v53 = vperm.slane %v1782_v52, 0 }
 0xef0   : > { %v2556_v0 = vpop.eup %2555 }
 0xef1   : > { %v1655_v1 = vsel %vm746_vm1, %v2556_v0, 0.0  ;;  %v1662_v12 = vpop.permute.xlu1 %1661 }
 0xef2   : > { %v1667_v15 = vsel %vm786_vm2, %v1662_v12, 0 }
 0xf5a   : > { %v3260_v54 = vpop.f32.mrf.mxu0 }
 0xf62   : > { %v1622_v55 = vpop.f32.mrf.mxu0 }
 0xf6a   : > { %v1722_v56 = vpop.f32.mrf.mxu0 }
 0xf6b   : > { %v1726_v57 = vmul.f32 0.35355338, %v1722_v56 }
 0xf6d   : > { %v1727_v58 = vsel %vm767_vm3, %v1726_v57, -1e+09 }
 0xf6e   : > { %v1728_v59 = vsel %vm746_vm1, %v1727_v58, -inf }
 0xf6f   : > { %1729 = vmax.xlane.f32.xlu0 %v1728_v59 }
 0xf72   : > { %v1724_v60 = vpop.f32.mrf.mxu0 }
 0xf73   : > { %v1791_v60 = vld [vmem:[%s3415_s10 + $0x10] sm:$0x1] }
 0xf74   : > { %v1792_v61 = vunpack.c.l.bf16 %v1791_v60 }
 0xf76   : > { %v1793_v62 = vperm.slane %v1792_v61, 0 }
 0xf83   : > { %1564 = vrot.lane.b32.xlu0 %v3214_v4, %s2800_s17 }
 0xfad   : > { %1656 = vadd.xlane.f32.xlu0 %v1655_v1  ;;  %v1847_v1 = vld [vmem:[%s686_s26] sm:$0xff]  ;;  %s3466_s26 = sld [smem:[#allocation30_spill]] }
 0xfb3   : > { %s694_s27 = scalar_lea.vmem %s3466_s26, %s3301_s6 }
 0xfe2   : > { %v1730_v2 = vpop.xlane.xlu0 %1729 }
 0xfe3   : > { %v1731_v3 = vsub.f32 %v1727_v58, %v1730_v2 }
 0xfe5   : > { %v1732_v5 = vmul.f32 1.442695, %v1731_v3 }
 0xfe7   : > { %2557 = vpow2.f32 %v1732_v5 }
 0xfe8   : > { %2559 = vrcp.f32 %v1560_v24 }
 0xfed   : > { %v2558_v6 = vpop.eup %2557 }
 0xfee   : > { %v1734_v8 = vsel %vm746_vm1, %v2558_v6, 0.0  ;;  %v2560_v9 = vpop.eup %2559 }
 0xfef   : > { %1735 = vadd.xlane.f32.xlu2 %v1734_v8  ;;  %v1562_v11 = vmul.f32 %v2560_v9, %v2554_v43 }
 0xff1   : > { %v1563_v16 = vpack.c.bf16 %v1562_v11, %v1562_v11 }
 0xff5   : > { %v1565_v13 = vpop.permute.xlu0 %1564 }
 0xff6   : > { %v1570_v14 = vsel %vm786_vm2, %v1565_v13, 0 }
 0xff7   : > { %1579 = vmatpush.bf16.msrb.mxu1 %v1570_v14 }
 0xffa   : > { %2385 = vmatmul.msk.bf16.vlgmr.msrb.gmra.mxu1 %vm746_vm1, %v1563_v16  ;;  %v1973_v16 = vld [vmem:[%s3464_s19] sm:$0xf]  ;;  %s2102_s19 = scalar_lea.hbm %s3467_s29, %s2417_s5 }
 0xffb   : > { %1676 = vmatpush.bf16.msra.mxu1 %v1667_v15  ;;  %v1879_v15 = vld [vmem:[%s3463_s16] sm:$0x7]  ;;  %v1974_v32 = vunpack.c.l.bf16 %v1973_v16  ;;  %s2106_s17 = sshll.u32 %s2102_s19, 4  ;;  %s2107_s17 = int_to_ptr.hbm [resolvable:$true] %s2106_s17 }
 0xffc   : > { %s2721_s18 = sshra.s32 %s2107_s17, 4  ;;  %s2722_s18 = int_to_ptr.hbm [resolvable:$true] %s2721_s18 }
 0xffd   : > { %p2728_p9 = scmp.lt.s32.totalorder %s2722_s18, %s3467_s29 }
 0xfff   : > { %1775 = vmatpush.bf16.msrb.mxu1 %v1766_v37 }
0x1007   : > { %1740 = vrot.lane.b32.xlu2 %v3214_v4, %s2799_s12  ;;  %s2104_s12 = sshll.u32 %s682_s1, 4  ;;  %s2105_s12 = int_to_ptr.vmem [resolvable:$true] %s2104_s12 }
0x1020   : > { %v1657_v17 = vpop.xlane.xlu0 %1656 }
0x1021   : > { %2561 = vrcp.f32 %v1657_v17  ;;  %v1885_v17 = vsel %vm1883_vm6, %v1879_v15, 0 }
0x1022   : > { %1894 = vmatpush.bf16.msra.mxu0 %v1885_v17 }
0x1027   : > { %v2562_v18 = vpop.eup %2561 }
0x1028   : > { %v1659_v19 = vmul.f32 %v2562_v18, %v2556_v0  ;;  %v1977_v18 = vsel %vm1883_vm6, %v1973_v16, 0 }
0x102a   : > { %v1660_v20 = vpack.c.bf16 %v1659_v19, %v1659_v19 }
0x102c   : > { %2389 = vmatmul.msk.bf16.vlgmr.msra.gmra.mxu1 %vm746_vm1, %v1660_v20 }
0x102d   : > { %1986 = vmatpush.bf16.msra.mxu1 %v1977_v18 }
0x1062   : > { %v1736_v10 = vpop.xlane.xlu2 %1735 }
0x1063   : > { %2563 = vrcp.f32 %v1736_v10 }
0x1069   : > { %v2564_v23 = vpop.eup %2563 }
0x106a   : > { %v1738_v25 = vmul.f32 %v2564_v23, %v2558_v6  ;;  %v1741_v26 = vpop.permute.xlu2 %1740 }
0x106b   : > { %v1746_v4 = vsel %vm786_vm2, %v1741_v26, 0 }
0x106c   : > { %v1739_v27 = vpack.c.bf16 %v1738_v25, %v1738_v25  ;;  %1755 = vmatpush.bf16.msrb.mxu2 %v1746_v4 }
0x106f   : > { %2392 = vmatmul.msk.bf16.vlgmr.msrb.gmra.mxu2 %vm746_vm1, %v1739_v27 }
0x1070   : > { %1918 = vmatpush.bf16.msra.mxu2 %v2428_v47 }
0x1074   : > { %1919 = vmatpush.bf16.msra.mxu2 %v2427_v49 }
0x1077   : > { %v1581_v28 = vpop.f32.mrf.mxu1 }
0x1078   : > { %v1585_v29 = vpack.c.bf16 %v1581_v28, %v1581_v28 }
0x107a   : > { %2386 = vmatmul.msk.bf16.vlgmr.msrb.gmra.mxu3 %vm746_vm1, %v1585_v29 }
0x107b   : > { %1815 = vmatpush.bf16.msrb.mxu3 %v2426_v46 }
0x107f   : > { %v1583_v30 = vpop.f32.mrf.mxu1  ;;  %1816 = vmatpush.bf16.msrb.mxu3 %v2425_v48 }
0x10a9   : > { %v1678_v33 = vpop.f32.mrf.mxu1 }
0x10aa   : > { %v1682_v34 = vpack.c.bf16 %v1678_v33, %v1678_v33  ;;  %v1925_v33 = vunpack.c.l.bf16 %v1878_v31 }
0x10ac   : > { %2390 = vmatmul.msk.bf16.vlgmr.msra.gmra.mxu3 %vm746_vm1, %v1682_v34  ;;  %v1975_v34 = vperm.slane %v1974_v32, 6 }
0x10b1   : > { %v1680_v35 = vpop.f32.mrf.mxu1 }
0x10b2   : > { %v1926_v35 = vperm.slane %v1925_v33, 0 }
0x10f2   : > { %v1757_v38 = vpop.f32.mrf.mxu2 }
0x10f3   : > { %v1761_v7 = vpack.c.bf16 %v1757_v38, %v1757_v38 }
0x10f5   : > { %2393 = vmatmul.msk.bf16.vlgmr.msrb.gmra.mxu1 %vm746_vm1, %v1761_v7 }
0x10fa   : > { %v1759_v39 = vpop.f32.mrf.mxu2 }
0x10fd   : > { %v1601_v40 = vpop.f32.mrf.mxu3 }
0x10fe   : > { %v1621_v42 = vadd.f32 %v3260_v54, %v1601_v40 }
0x1105   : > { %v1603_v41 = vpop.f32.mrf.mxu3 }
0x112f   : > { %v1698_v43 = vpop.f32.mrf.mxu3 }
0x1130   : > { %v1702_v44 = vadd.f32 %v1698_v43, %v1621_v42 }
0x1137   : > { %v1700_v45 = vpop.f32.mrf.mxu3 }
0x1172   : > { %v1777_v54 = vpop.f32.mrf.mxu1 }
0x1173   : > { %v1781_v55 = vadd.f32 %v1777_v54, %v1702_v44  ;;  %v1928_v54 = vlaneseq }
0x1175   : > { %v1784_v56 = vadd.f32 %v1783_v53, %v1781_v55 }
0x1177   : > { %v1785_v57 = vmax.f32 %v1784_v56, 0.0 }
0x1179   : > { %v1786_v58 = vpack.c.bf16 %v1785_v57, %v1785_v57 }
0x117a   : > { %v1779_v59 = vpop.f32.mrf.mxu1 }
0x117b   : > { %2402 = vmatmul.msk.bf16.vlgmr.msrb.gmra.mxu3 %vm1088_vm4, %v1786_v58  ;;  %2412 = vmatmul.msk.bf16.vlgmr.msra.gmra.mxu2 %vm1088_vm4, %v1786_v58  ;;  %v1929_v59 = vand.u32 127, %v1928_v54 }
0x117d   : > { %vm1930_vm12 = vcmp.ge.s32.totalorder %v1929_v59, 32 }
0x11fe   : > { %v1818_v63 = vpop.f32.mrf.mxu3  ;;  %v1921_v0 = vpop.f32.mrf.mxu2 }
0x11ff   : > { %v3325_v2 = vadd.f32 %v1818_v63, %v1793_v62 }
0x1201   : > { %v1823_v3 = vsel %vm1822_vm5, %v3325_v2, -inf  ;;  %v1848_v5 = vadd.f32 %v1847_v1, %v3325_v2 }
0x1202   : > { %1824 = vmax.xlane.f32.xlu1 %v1823_v3 }
0x1203   : > { %v1849_v24 = vsel %vm1822_vm5, %v1848_v5, -inf }
0x1204   : > { %1850 = vmax.xlane.f32.xlu0 %v1849_v24 }
0x1206   : > { %v1820_v6 = vpop.f32.mrf.mxu3  ;;  %v1923_v8 = vpop.f32.mrf.mxu2 }
0x1277   : > { %v1851_v9 = vpop.xlane.xlu0 %1850 }
0x1278   : > { %v1852_v11 = vsub.f32 %v1848_v5, %v1851_v9 }
0x127a   : > { %v1853_v12 = vmul.f32 1.442695, %v1852_v11 }
0x127c   : > { %2565 = vpow2.f32 %v1853_v12 }
0x1282   : > { %v2566_v13 = vpop.eup %2565 }
0x1283   : > { %v1855_v14 = vsel %vm1822_vm5, %v2566_v13, 0.0 }
0x1284   : > { %1856 = vadd.xlane.f32.xlu2 %v1855_v14 }
0x12f7   : > { %v1857_v19 = vpop.xlane.xlu2 %1856 }
0x12f8   : > { %2567 = vrcp.f32 %v1857_v19  ;;  %v1869_v10 = vand.u32 2147483648, %v1857_v19  ;;  %v1867_v25 = vand.u32 2147483647, %v1857_v19  ;;  %vm1863_vm8 = vweird.f32 %v1857_v19 }
0x12fa   : > { %v1870_v4 = vor.u32 1.1754944e-38, %v1869_v10  ;;  %vm1868_vm10 = vcmp.eq.f32.partialorder %v1867_v25, 8.507059e+37 }
0x12fe   : > { %v2568_v20 = vpop.eup %2567 }
0x12ff   : > { %v1859_v21 = vmul.f32 %v2568_v20, %v1857_v19  ;;  %vm1864_vm7 = vweird.f32 %v2568_v20 }
0x1300   : > { %vm1865_vm9 = vmor %vm1863_vm8, %vm1864_vm7 }
0x1301   : > { %v1860_v22 = vsub.f32 1.0, %v1859_v21 }
0x1303   : > { %v1861_v23 = vmul.f32 %v2568_v20, %v1860_v22 }
0x1305   : > { %v1862_v26 = vadd.f32 %v2568_v20, %v1861_v23  ;;  %v1965_v23 = vpop.permute.xlu1 %1964 }
0x1307   : > { %v1866_v27 = vsel %vm1865_vm9, %v2568_v20, %v1862_v26 }
0x1308   : > { %v1871_v28 = vsel %vm1868_vm10, %v1870_v4, %v1866_v27 }
0x1309   : > { %v3338_v29 = vmul.f32 %v2566_v13, %v1871_v28 }
0x130b   : > { %v1873_v30 = vpack.c.bf16 %v3338_v29, %v3338_v29 }
0x130d   : > { %2403 = vmatmul.msk.bf16.vlgmr.msra.gmra.mxu0 %vm1822_vm5, %v1873_v30  ;;  %2413 = vmatmul.msk.bf16.vlgmr.msra.gmra.mxu1 %vm1822_vm5, %v1873_v30  ;;  %v1825_v4 = vpop.xlane.xlu1 %1824 }
0x130e   : > { %v1826_v27 = vsub.f32 %v3325_v2, %v1825_v4 }
0x1310   : > { %v1827_v28 = vmul.f32 1.442695, %v1826_v27 }
0x138a   : > { %v1896_v36 = vpop.f32.mrf.mxu0  ;;  %v1988_v37 = vpop.f32.mrf.mxu1 }
0x138b   : > { %v1922_v38 = vadd.f32 %v1921_v0, %v1896_v36  ;;  %v1989_v7 = vadd.f32 %v1988_v37, %v1975_v34 }
0x138d   : > { %v1927_v39 = vadd.f32 %v1926_v35, %v1922_v38  ;;  %v1995_v40 = vand.u32 2147483647, %v1989_v7  ;;  %v1992_v0 = vmax.f32 %v1989_v7, 0.0  ;;  %vm1993_vm14 = vcmp.ne.f32.partialorder %v1989_v7, %v1989_v7 }
0x138f   : > { %v1934_v41 = vand.u32 2147483647, %v1927_v39  ;;  %v1996_v42 = vsub.f32 0.0, %v1995_v40  ;;  %v1931_v24 = vmax.f32 %v1927_v39, 0.0  ;;  %vm1932_vm0 = vcmp.ne.f32.partialorder %v1927_v39, %v1927_v39 }
0x1391   : > { %v1935_v43 = vsub.f32 0.0, %v1934_v41  ;;  %v1997_v44 = vmul.f32 1.442695, %v1996_v42 }
0x1392   : > { %v1898_v45 = vpop.f32.mrf.mxu0  ;;  %v1990_v46 = vpop.f32.mrf.mxu1 }
0x1393   : > { %v1936_v47 = vmul.f32 1.442695, %v1935_v43  ;;  %2569 = vpow2.f32 %v1997_v44 }
0x1395   : > { %2571 = vpow2.f32 %v1936_v47 }
0x1399   : > { %v2570_v48 = vpop.eup %2569 }
0x139a   : > { %v1999_v49 = vadd.f32 1.0, %v2570_v48  ;;  %v2002_v51 = vmul.f32 -0.5, %v2570_v48  ;;  %v2005_v56 = vand.u32 2147483647, %v2570_v48 }
0x139b   : > { %v2572_v50 = vpop.eup %2571 }
0x139c   : > { %v1938_v52 = vadd.f32 1.0, %v2572_v50  ;;  %2573 = vlog2.f32 %v1999_v49  ;;  %v1941_v53 = vmul.f32 -0.5, %v2572_v50  ;;  %v2003_v55 = vadd.f32 1.0, %v2002_v51 }
0x139d   : > { %v1944_v60 = vand.u32 2147483647, %v2572_v50  ;;  %vm2006_vm11 = vcmp.lt.f32.partialorder %v2005_v56, 0.0004427343 }
0x139e   : > { %2575 = vlog2.f32 %v1938_v52  ;;  %v1942_v57 = vadd.f32 1.0, %v1941_v53  ;;  %v2004_v62 = vmul.f32 %v2570_v48, %v2003_v55 }
0x139f   : > { %vm1945_vm13 = vcmp.lt.f32.partialorder %v1944_v60, 0.0004427343 }
0x13a0   : > { %v1943_v3 = vmul.f32 %v2572_v50, %v1942_v57 }
0x13a2   : > { %v2574_v58 = vpop.eup %2573 }
0x13a3   : > { %v2001_v61 = vmul.f32 0.6931472, %v2574_v58 }
0x13a4   : > { %v2576_v63 = vpop.eup %2575 }
0x13a5   : > { %v1940_v1 = vmul.f32 0.6931472, %v2576_v63  ;;  %v2007_v5 = vsel %vm2006_vm11, %v2004_v62, %v2001_v61 }
0x13a6   : > { %v2008_v6 = vadd.f32 %v2007_v5, %v1992_v0 }
0x13a7   : > { %v1946_v8 = vsel %vm1945_vm13, %v1943_v3, %v1940_v1 }
0x13a8   : > { %v1947_v9 = vadd.f32 %v1946_v8, %v1931_v24  ;;  %v2009_v11 = vsel %vm1993_vm14, %v1989_v7, %v2008_v6 }
0x13a9   : > { %v2010_v12 = vsel %vm1930_vm12, %v2009_v11, %v1989_v7 }
0x13aa   : > { %v1948_v13 = vsel %vm1932_vm0, %v1927_v39, %v1947_v9  ;;  %2055 = vst.msk [vmem:[%s698_s22] sm:$0xff] %vm2051_vm15, %v2010_v12  ;;  %s2723_s22 = scalar_lea.hbm %s2722_s18, 8 }
0x13ab   : > { %v1949_v14 = vsel %vm1930_vm12, %v1948_v13, %v1927_v39  ;;  %p2724_p3 = scmp.ne.s32.totalorder %s2722_s18, %s2723_s22 }
0x13ac   : > { %2577 = vrsqrt.f32 %v1949_v14  ;;  %vm1957_vm2 = vcmp.eq.f32.partialorder %v1949_v14, inf  ;;  %v1960_v22 = vand.u32 2147483648, %v1949_v14  ;;  %vm1959_vm3 = vcmp.eq.f32.partialorder %v1949_v14, 0.0 }
0x13ad   : > { %2579 = vpow2.f32 %v1827_v28  ;;  %p2725_p12 = pnand %p2724_p3, %p2964_p4 }
0x13af   : > { %p2726_p7 = pneg %p2725_p12 }
0x13b2   : > { %v2578_v15 = vpop.eup %2577 }
0x13b3   : > { %v1951_v16 = vmul.f32 %v2578_v15, %v1949_v14  ;;  %v2580_v30 = vpop.eup %2579 }
0x13b4   : > { %v1829_v31 = vsel %vm1822_vm5, %v2580_v30, 0.0 }
0x13b5   : > { %v1952_v17 = vmul.f32 %v2578_v15, %v1951_v16 }
0x13b7   : > { %v1953_v18 = vmul.f32 0.5, %v1952_v17 }
0x13b9   : > { %v1954_v19 = vsub.f32 1.5, %v1953_v18 }
0x13bb   : > { %v1955_v20 = vmul.f32 %v2578_v15, %v1954_v19 }
0x13bd   : > { %v1956_v21 = vmul.f32 %v1955_v20, %v1949_v14 }
0x13bf   : > { %v1958_v10 = vsel %vm1957_vm2, %v1949_v14, %v1956_v21 }
0x13c0   : > { %v1961_v25 = vsel %vm1959_vm3, %v1960_v22, %v1958_v10 }
0x13c1   : > { %v1967_v26 = vmul.f32 %v1965_v23, %v1961_v25 }
0x13c3   : > { %1969 = vrot.lane.b32.xlu0 %v1967_v26, %s2792_s28  ;;  %s2804_s28 = smov 6  }
0x13ed   : > { %1830 = vadd.xlane.f32.xlu0 %v1829_v31 }
0x1435   : > { %v1970_v32 = vpop.permute.xlu0 %1969 }
0x1436   : > { %v1972_v33 = vadd.f32 %v1970_v32, %v1949_v14 }
0x1438   : > { %v2011_v34 = vpack.c.bf16 %v1972_v33, %v1972_v33  ;;  %2048 = vrot.lane.b32.xlu2 %v1972_v33, %s2797_s21 }
0x143a   : > { %v2013_v35 = vsel %vm1088_vm4, %v2011_v34, 0 }
0x143b   : > { %2022 = vmatpush.bf16.xpose.msra.mxu3 %v2013_v35 }
0x1440   : > { %2061 = vrot.lane.b32.xlu2 %v3338_v29, %s2803_s20 }
0x1442   : > { %2414 = vmatmul.msk.bf16.vlgmr.msra.gmra.mxu3 %vm1088_vm4, %v2011_v34  ;;  %vm2053_vm4 = vcmask 785408  }
0x1460   : > { %v1831_v36 = vpop.xlane.xlu0 %1830 }
0x1461   : > { %2581 = vrcp.f32 %v1831_v36  ;;  %v1843_v39 = vand.u32 2147483648, %v1831_v36  ;;  %v1841_v41 = vand.u32 2147483647, %v1831_v36  ;;  %vm1837_vm7 = vweird.f32 %v1831_v36 }
0x1463   : > { %v1844_v43 = vor.u32 1.1754944e-38, %v1843_v39  ;;  %vm1842_vm9 = vcmp.eq.f32.partialorder %v1841_v41, 8.507059e+37 }
0x1467   : > { %v2582_v37 = vpop.eup %2581 }
0x1468   : > { %v1833_v38 = vmul.f32 %v2582_v37, %v1831_v36  ;;  %vm1838_vm6 = vweird.f32 %v2582_v37 }
0x1469   : > { %vm1839_vm8 = vmor %vm1837_vm7, %vm1838_vm6 }
0x146a   : > { %v1834_v7 = vsub.f32 1.0, %v1833_v38 }
0x146c   : > { %v1835_v40 = vmul.f32 %v2582_v37, %v1834_v7 }
0x146e   : > { %v1836_v42 = vadd.f32 %v2582_v37, %v1835_v40 }
0x1470   : > { %v1840_v44 = vsel %vm1839_vm8, %v2582_v37, %v1836_v42 }
0x1471   : > { %v1845_v45 = vsel %vm1842_vm9, %v1844_v43, %v1840_v44 }
0x1472   : > { %v1846_v29 = vmul.f32 %v2580_v30, %v1845_v45 }
0x1474   : > { %2057 = vrot.lane.b32.xlu1 %v1846_v29, %s2804_s28  ;;  %s2727_s28 = scalar_lea.hbm %s3467_s29, 16 }
0x1475   : > { %p2729_p8 = scmp.lt.s32.totalorder %s2727_s28, %s2723_s22 }
0x1477   : > { %p2730_p10 = por %p2729_p8, %p2728_p9 }
0x1479   : > { %p2731_p11 = pnand %p2730_p10, %p2726_p7 }
0x1492   : > { %v2049_v46 = vpop.permute.xlu2 %2048 }
0x1493   : > { %v2052_v47 = vsel %vm2051_vm15, %v1949_v14, %v2049_v46 }
0x1494   : > { %2054 = vst.msk [vmem:[%s694_s27] sm:$0xff] %vm2053_vm4, %v2052_v47 }
0x14c5   : > { %v2024_v48 = vpop.f32.mrf.mxu3 }
0x14c6   : > { %v2415_v49 = vmul.f32 -1.442695, %v2024_v48 }
0x14c8   : > { %2583 = vpow2.f32 %v2415_v49 }
0x14cd   : > { %v2026_v50 = vpop.f32.mrf.mxu3 }
0x14ce   : > { %v2584_v51 = vpop.eup %2583 }
0x14cf   : > { %v2031_v52 = vadd.f32 1.0, %v2584_v51 }
0x14d1   : > { %2585 = vrcp.f32 %v2031_v52  ;;  %v2043_v56 = vand.u32 2147483648, %v2031_v52  ;;  %v2041_v58 = vand.u32 2147483647, %v2031_v52  ;;  %vm2037_vm11 = vweird.f32 %v2031_v52 }
0x14d3   : > { %v2044_v60 = vor.u32 1.1754944e-38, %v2043_v56  ;;  %vm2042_vm13 = vcmp.eq.f32.partialorder %v2041_v58, 8.507059e+37 }
0x14d7   : > { %v2586_v53 = vpop.eup %2585 }
0x14d8   : > { %v2033_v54 = vmul.f32 %v2586_v53, %v2031_v52  ;;  %vm2038_vm10 = vweird.f32 %v2586_v53 }
0x14d9   : > { %vm2039_vm12 = vmor %vm2037_vm11, %vm2038_vm10 }
0x14da   : > { %v2034_v55 = vsub.f32 1.0, %v2033_v54 }
0x14dc   : > { %v2035_v57 = vmul.f32 %v2586_v53, %v2034_v55 }
0x14de   : > { %v2036_v59 = vadd.f32 %v2586_v53, %v2035_v57 }
0x14e0   : > { %v2040_v61 = vsel %vm2039_vm12, %v2586_v53, %v2036_v59 }
0x14e1   : > { %v2045_v62 = vsel %vm2042_vm13, %v2044_v60, %v2040_v61 }
0x14e2   : > { %2069 = vst.msk [vmem:[%s682_s1] sm:$0xff] %vm746_vm1, %v2045_v62 }
0x14e3   : > { %2734 = shalt.err (!%p2731_p11)
}
0x14e4   : > { %2441 = dma.vmem_to_hbm [thread:$0]  (%p2964_p4), %s2105_s12, 128, %s2107_s17, %s2083_s30   ;;  %vm2065_vm1 = vcmask 97280   ;;  %vm2067_vm14 = vcmask 146432   ;;  %v2062_v0 = vpop.permute.xlu2 %2061 }
0x14e5   : > { %s3469_s27 = sld [smem:[#allocation32_spill]] }
0x14e6   : > { %v2058_v63 = vpop.permute.xlu1 %2057 }
0x14e7   : > { %v2064_v1 = vsel %vm1822_vm5, %v3325_v2, %v2058_v63 }
0x14e8   : > { %v2066_v3 = vsel %vm2065_vm1, %v2064_v1, %v2062_v0 }
0x14eb   : > { %s702_s5 = scalar_lea.vmem %s3469_s27, %s3301_s6 }
0x14ec   : > { %2068 = vst.msk [vmem:[%s702_s5] sm:$0xff] %vm2067_vm14, %v2066_v3 }
0x14ed PF: > { %s3470_s16 = sld [smem:[#allocation16_spill]] }
0x14ee   : > { %s3472_s19 = sld [smem:[#allocation18_spill]] }
0x14f3   : > { %s2139_s1 = sand.u32 1, %s3470_s16  }
0x14f4   : > { %p3473_p4 = scmp.ge.s32.totalorder %s3472_s19, 2  ;;  %s2140_s12 = scalar_lea.sflag [#allocation4], %s2139_s1 }
0x14f6   : > { %p2458_p5 = pnand %p3473_p4, %p2968_p6 }
0x14f8   : > { %p2459_p13 = pneg %p2458_p5 }
0x14fa   : > { %2768 = dma.done.wait (%p2459_p13), %s2140_s12, 128  }
0x14fb   : > { %2770 = vsyncadd (%p2459_p13), %s2140_s12, 4294967168  ;;  %s3474_s27 = sld [smem:[#allocation19_spill]]  ;;  %s3477_s24 = smov %s2777_s25 }
0x14fc   : > { %s3475_s6 = sld [smem:[#allocation17_spill]] }
0x14fd   : > { %s3476_s26 = sld [smem:[#allocation20_spill]] }
0x1501   : > { %p35_p0 = scmp.ge.s32.totalorder %s3474_s27, 4  }
0x1502   : > { %s3478_s25 = smov %s3475_s6 }
0x1503   :  { %37 = sbr.rel (!%p35_p0) target bundleno = 20 (0x14), region = 184 }
0x1508   :  { %2146 = vsyncpa [#allocation3], 1 }
0x1509   :  { %2148 = vsyncpa [#allocation3 + $0x1], 1 }
0x150a   :  { %2149 = vsyncpa [#allocation6], 1 }
0x150b   :  { %2151 = vsyncpa [#allocation6 + $0x1], 1 }
0x150c   :  { %2152 = vsyncpa [#allocation9], 1 }
0x150d   :  { %2153 = vsyncpa [#allocation4], 1 }
0x150e   :  { %2155 = vsyncpa [#allocation4 + $0x1], 1 }

</bundles_post_ra>
